<compile_context>
chip_gen: v7x
topology: tpu7x:2x2x1
jax: 0.10.0
libtpu: 0.0.40
codegen_flags: <defaults>
</compile_context>

<pallas_src>
import jax
import jax.numpy as jnp
from jax.experimental import pallas as pl
from jax.experimental.pallas import tpu as pltpu

BN_EPS = 1e-5


# --------------------------- small helpers ----------------------------------

def _round_up(n, m):
    return ((n + m - 1) // m) * m


_VMEM_BUDGET = None


def _vmem_budget():
    """Generation-aware VMEM budget (bytes) for tile selection / vmem limit."""
    global _VMEM_BUDGET
    if _VMEM_BUDGET is None:
        cap = None
        try:
            cap = getattr(pltpu.get_tpu_info(), "vmem_capacity_bytes", None)
        except Exception:
            cap = None
        if not cap or cap <= 0:
            cap = 64 << 20            # conservative: v7x has 64 MiB / TensorCore
        _VMEM_BUDGET = int(cap * 0.70)
    return _VMEM_BUDGET


def _pick_tk(k, cap=512):
    """Largest K tile <= cap that divides K and is lane-aligned (mult of 128),
    otherwise fall back to the full (untiled) K dimension."""
    if k <= cap:
        return k
    for t in range(cap - cap % 128, 0, -128):
        if k % t == 0:
            return t
    return k


def _fold_bn(w2d, bn):
    """Fold inference BatchNorm (running stats) into weight / bias, in f32."""
    scale = (bn["gamma"] / jnp.sqrt(bn["var"] + BN_EPS)).astype(jnp.float32)
    bias = (bn["beta"] - bn["mean"] * scale).astype(jnp.float32)
    return w2d.astype(jnp.float32) * scale[None, :], bias


# ----------------------------- Pallas kernels -------------------------------

def _make_mm_kernel(relu, mode):
    """K-tiled matmul with fused epilogue.

    mode: "plain"     -> out = act(x @ w + b)
          "residual"  -> out = act(x @ w + b + r)
          "down"      -> out = act(x @ w + b + xs @ wd + bd)   (fused downsample)
    """
    def kernel(*refs):
        if mode == "plain":
            x_ref, w_ref, b_ref, o_ref, acc_ref = refs
        elif mode == "residual":
            x_ref, w_ref, b_ref, r_ref, o_ref, acc_ref = refs
        else:  # "down"
            x_ref, w_ref, b_ref, xs_ref, wd_ref, bd_ref, o_ref, acc_ref = refs

        @pl.when(pl.program_id(1) == 0)
        def _init():
            acc_ref[...] = jnp.zeros_like(acc_ref)

        acc_ref[...] += jnp.dot(x_ref[...], w_ref[...],
                                preferred_element_type=jnp.float32)

        @pl.when(pl.program_id(1) == pl.num_programs(1) - 1)
        def _finalize():
            y = acc_ref[...] + b_ref[...]
            if mode == "residual":
                y = y + r_ref[...].astype(jnp.float32)
            elif mode == "down":
                y = y + jnp.dot(xs_ref[...], wd_ref[...],
                                preferred_element_type=jnp.float32) + bd_ref[...]
            if relu:
                y = jnp.maximum(y, 0.0)
            o_ref[...] = y.astype(o_ref.dtype)

    return kernel


def _make_conv3x3_kernel(Ho, Wo, s, d, C, Cout):
    """Direct 3x3 conv (stride s, dilation d, padding d) for one image.

    x_ref: (1, Hp, Wp, C) padded activation, w_ref: (9, C, Cout) folded weight,
    b_ref: (1, Cout) folded BN bias, o_ref: (1, Ho*Wo, Cout).
    The 9 taps are 9 accumulated matmuls on VMEM slices -- no HBM im2col.
    """
    def kernel(x_ref, w_ref, b_ref, o_ref):
        img = x_ref[0]                                   # (Hp, Wp, C)
        acc = jnp.zeros((Ho * Wo, Cout), jnp.float32)
        for ky in range(3):
            for kx in range(3):
                patch = jax.lax.slice(
                    img,
                    (ky * d, kx * d, 0),
                    (ky * d + (Ho - 1) * s + 1, kx * d + (Wo - 1) * s + 1, C),
                    (s, s, 1))
                patch = patch.reshape(Ho * Wo, C)
                acc = acc + jnp.dot(patch, w_ref[3 * ky + kx],
                                    preferred_element_type=jnp.float32)
        y = jnp.maximum(acc + b_ref[...], 0.0)
        o_ref[0] = y.astype(o_ref.dtype)

    return kernel


# ------------------------------- wrappers ------------------------------------

def _matmul_call(x2d, w, b, *, relu, out_dtype, tm_max=512,
                 residual=None, down=None):
    """act(x2d @ w + b [+ residual | + xs @ wd + bd]) over flattened tokens.

    Token axis is tiled by tm ("parallel"), the contraction axis by tk
    ("arbitrary", last) with an f32 accumulator scratch.
    """
    assert residual is None or down is None
    n, K = x2d.shape
    cout = w.shape[1]
    xs = wd = bd = None
    if down is not None:
        xs, wd, bd = down

    xb = x2d.dtype.itemsize
    wb = w.dtype.itemsize
    ob = jnp.dtype(out_dtype).itemsize
    budget = _vmem_budget()

    tk = _pick_tk(K)
    nk = K // tk

    # Pick tm under the VMEM budget (double buffers + accumulator scratch).
    tm = min(tm_max, _round_up(n, 256))
    while True:
        extra = 0
        if residual is not None:
            extra = 2 * tm * cout * residual.dtype.itemsize
        elif down is not None:
            extra = (2 * tm * xs.shape[1] * xs.dtype.itemsize
                     + 2 * wd.shape[0] * cout * wd.dtype.itemsize
                     + 2 * cout * 4)
        est = (2 * tm * tk * xb            # streamed x tiles (double buffered)
               + 2 * tk * cout * wb        # weight tiles
               + 2 * cout * 4              # bias
               + 2 * tm * cout * ob        # output tiles
               + tm * cout * 4             # f32 accumulator scratch
               + extra)
        if est <= int(budget * 0.85) or tm <= 128:
            break
        tm //= 2

    # TODO(synk): handle the ragged last token tile with an in-kernel masked
    # store instead of this wrapper-side pad (extra HBM round trip when hit).
    n_pad = (-n) % tm
    if n_pad:
        x2d = jnp.pad(x2d, ((0, n_pad), (0, 0)))
        if residual is not None:
            residual = jnp.pad(residual, ((0, n_pad), (0, 0)))
        if down is not None:
            xs = jnp.pad(xs, ((0, n_pad), (0, 0)))
    nt = n + n_pad

    b2 = b.reshape(1, cout).astype(jnp.float32)
    in_specs = [
        pl.BlockSpec((tm, tk), lambda i, k: (i, k)),     # streamed token tile
        pl.BlockSpec((tk, cout), lambda i, k: (k, 0)),   # folded weight slab
        pl.BlockSpec((1, cout), lambda i, k: (0, 0)),    # folded BN bias
    ]
    args = [x2d, w, b2]
    mode = "plain"
    if residual is not None:
        mode = "residual"
        in_specs.append(pl.BlockSpec((tm, cout), lambda i, k: (i, 0)))
        args.append(residual)
    elif down is not None:
        mode = "down"
        cind = xs.shape[1]
        in_specs += [
            pl.BlockSpec((tm, cind), lambda i, k: (i, 0)),    # xs tokens
            pl.BlockSpec((cind, cout), lambda i, k: (0, 0)),  # downsample weight
            pl.BlockSpec((1, cout), lambda i, k: (0, 0)),     # downsample bias
        ]
        args += [xs, wd, bd.reshape(1, cout).astype(jnp.float32)]

    vmem_limit = int(min(budget, max(32 << 20, 2 * est)))

    out = pl.pallas_call(
        _make_mm_kernel(relu, mode),
        out_shape=jax.ShapeDtypeStruct((nt, cout), out_dtype),
        grid_spec=pltpu.PrefetchScalarGridSpec(
            num_scalar_prefetch=0,
            grid=(nt // tm, nk),
            in_specs=in_specs,
            out_specs=pl.BlockSpec((tm, cout), lambda i, k: (i, 0)),
            scratch_shapes=[pltpu.VMEM((tm, cout), jnp.float32)]),
        compiler_params=pltpu.CompilerParams(
            dimension_semantics=("parallel", "arbitrary"),
            vmem_limit_bytes=vmem_limit),
    )(*args)
    return out[:n] if n_pad else out


def _conv3x3_call(x, w9, b, *, stride, dilation, out_dtype):
    """3x3 conv + folded BN + ReLU, one image per grid step (megacore parallel)."""
    B, H, W, C = x.shape
    d, s = dilation, stride
    Ho = (H - 1) // s + 1
    Wo = (W - 1) // s + 1
    Cout = w9.shape[-1]
    Hp, Wp = H + 2 * d, W + 2 * d

    # TODO(synk): the spatial zero-pad could be fused into the conv1 epilogue
    # (or handled with in-kernel edge masks) to drop this HBM round trip too.
    xp = jnp.pad(x, ((0, 0), (d, d), (d, d), (0, 0)))
    b2 = b.reshape(1, Cout).astype(jnp.float32)

    xb = x.dtype.itemsize
    wb = w9.dtype.itemsize
    ob = jnp.dtype(out_dtype).itemsize
    est = (2 * Hp * Wp * C * xb + 2 * 9 * C * Cout * wb + 2 * Cout * 4
           + 2 * Ho * Wo * Cout * ob + Ho * Wo * Cout * 4
           + 4 * Ho * Wo * C * 4)        # headroom for per-tap patch temporaries
    budget = _vmem_budget()
    vmem_limit = int(min(budget, max(32 << 20, 2 * est)))

    out = pl.pallas_call(
        _make_conv3x3_kernel(Ho, Wo, s, d, C, Cout),
        out_shape=jax.ShapeDtypeStruct((B, Ho * Wo, Cout), out_dtype),
        grid_spec=pltpu.PrefetchScalarGridSpec(
            num_scalar_prefetch=0,
            grid=(B,),
            in_specs=[
                pl.BlockSpec((1, Hp, Wp, C), lambda bi: (bi, 0, 0, 0)),
                pl.BlockSpec((9, C, Cout), lambda bi: (0, 0, 0)),
                pl.BlockSpec((1, Cout), lambda bi: (0, 0)),
            ],
            out_specs=pl.BlockSpec((1, Ho * Wo, Cout), lambda bi: (bi, 0, 0)),
        ),
        compiler_params=pltpu.CompilerParams(
            dimension_semantics=("parallel",),
            vmem_limit_bytes=vmem_limit),
    )(xp, w9, b2)
    return out, Ho, Wo


def bottleneck_forward(x, p, *, stride=1, dilation=1, groups=1, tm=512,
                       matmul_bf16=True):
    """
    x: [B, H, W, inplanes] channels-last.
    p: dict with
       w1 [Cin, width], bn1 | w2 [3,3,width,width] (HWIO), bn2 |
       w3 [width, 4*planes], bn3 | optional wd [Cin, 4*planes], bnd.
       Each bn* dict: gamma, beta, mean, var (inference running stats).
    """
    if groups != 1:
        # TODO(synk): grouped 3x3 conv (groups > 1) not implemented in the
        # Pallas path (would need per-group matmuls / block-diagonal weights).
        raise NotImplementedError("groups > 1 not supported")

    out_dtype = x.dtype
    cdt = jnp.bfloat16 if matmul_bf16 else jnp.float32

    B, H, W, cin = x.shape
    width = p["w1"].shape[1]
    cout = p["w3"].shape[1]

    xc = x.astype(cdt)

    # conv1 (1x1) + bn1 + relu --- one K-tiled matmul kernel.
    w1f, b1f = _fold_bn(p["w1"], p["bn1"])
    h1 = _matmul_call(xc.reshape(-1, cin), w1f.astype(cdt), b1f,
                      relu=True, out_dtype=cdt, tm_max=tm)
    # TODO(synk): for width < 128 (layer1) the conv1/conv2 output is not
    # lane-dense; padding width to 128 for that stage is a possible further win.
    h1 = h1.reshape(B, H, W, width)

    # conv2 (3x3, stride, dilation) + bn2 + relu --- direct kernel, no im2col.
    w2f, b2f = _fold_bn(p["w2"].reshape(9 * width, width), p["bn2"])
    w2f = w2f.reshape(9, width, width).astype(cdt)
    h2, Ho, Wo = _conv3x3_call(h1, w2f, b2f, stride=stride, dilation=dilation,
                               out_dtype=cdt)
    h2 = h2.reshape(-1, width)

    # conv3 (1x1) + bn3 + identity/downsample + relu, fully fused epilogue.
    w3f, b3f = _fold_bn(p["w3"], p["bn3"])
    if p.get("wd", None) is not None:
        xs = xc[:, ::stride, ::stride, :].reshape(-1, cin)
        wdf, bdf = _fold_bn(p["wd"], p["bnd"])
        out = _matmul_call(h2, w3f.astype(cdt), b3f, relu=True,
                           out_dtype=out_dtype, tm_max=tm,
                           down=(xs, wdf.astype(cdt), bdf))
    else:
        if stride != 1 or cin != cout:
            raise ValueError(
                "identity shortcut requires stride == 1 and inplanes == "
                "4*planes; provide wd/bnd for a downsample branch")
        out = _matmul_call(h2, w3f.astype(cdt), b3f, relu=True,
                           out_dtype=out_dtype, tm_max=tm,
                           residual=xc.reshape(-1, cin))
    return out.reshape(B, Ho, Wo, cout)


# ------------------------------- reference -----------------------------------

def _reference(x, p, *, stride=1, dilation=1):
    """Pure-JAX (lax.conv) reference with inference-mode BatchNorm."""
    def bn(y, b):
        scale = b["gamma"] / jnp.sqrt(b["var"] + BN_EPS)
        return y * scale + (b["beta"] - b["mean"] * scale)

    def conv(y, w_hwio, s, d, pad):
        return jax.lax.conv_general_dilated(
            y, w_hwio, window_strides=(s, s), padding=pad,
            rhs_dilation=(d, d),
            dimension_numbers=("NHWC", "HWIO", "NHWC"),
            precision=jax.lax.Precision.HIGHEST)

    cin, width = p["w1"].shape
    cout = p["w3"].shape[1]
    out = jax.nn.relu(bn(conv(x, p["w1"].reshape(1, 1, cin, width),
                              1, 1, "VALID"), p["bn1"]))
    out = jax.nn.relu(bn(conv(out, p["w2"], stride, dilation,
                              [(dilation, dilation), (dilation, dilation)]),
                         p["bn2"]))
    out = bn(conv(out, p["w3"].reshape(1, 1, width, cout), 1, 1, "VALID"),
             p["bn3"])
    if p.get("wd", None) is not None:
        ident = bn(conv(x, p["wd"].reshape(1, 1, cin, cout),
                        stride, 1, "VALID"), p["bnd"])
    else:
        ident = x
    return jax.nn.relu(out + ident)


# --------------------------------- demo ---------------------------------------

if __name__ == "__main__":
    root = jax.random.PRNGKey(0)
    kx, k1, k2 = jax.random.split(root, 3)

    # ResNet-50 layer1 at small spatial size:
    #   block 1: inplanes=64 -> width=64 -> out=256, stride=1, with downsample
    #   block 2: inplanes=256 -> width=64 -> out=256, identity shortcut
    B, H, W = 2, 16, 16
    inplanes, planes = 64, 64
    cout = planes * 4

    x = jax.random.normal(kx, (B, H, W, inplanes), dtype=jnp.float32)

    def bn_params(k, c):
        a, b_, c_, d_ = jax.random.split(k, 4)
        return dict(
            gamma=jax.random.uniform(a, (c,), minval=0.5, maxval=1.5),
            beta=0.1 * jax.random.normal(b_, (c,)),
            mean=0.1 * jax.random.normal(c_, (c,)),
            var=jax.random.uniform(d_, (c,), minval=0.5, maxval=1.5),
        )

    def conv_w(k, kh, kw, ci, co):
        fan_in = kh * kw * ci
        return (jax.random.normal(k, (kh, kw, ci, co), dtype=jnp.float32)
                / jnp.sqrt(float(fan_in)))

    def make_block(k, cin_, planes_, downsample):
        ks = jax.random.split(k, 8)
        w_, co_ = planes_, planes_ * 4
        prm = dict(
            w1=conv_w(ks[0], 1, 1, cin_, w_).reshape(cin_, w_),
            bn1=bn_params(ks[1], w_),
            w2=conv_w(ks[2], 3, 3, w_, w_),
            bn2=bn_params(ks[3], w_),
            w3=conv_w(ks[4], 1, 1, w_, co_).reshape(w_, co_),
            bn3=bn_params(ks[5], co_),
        )
        if downsample:
            prm["wd"] = conv_w(ks[6], 1, 1, cin_, co_).reshape(cin_, co_)
            prm["bnd"] = bn_params(ks[7], co_)
        return prm

    params1 = make_block(k1, inplanes, planes, True)
    params2 = make_block(k2, cout, planes, False)

    # ---- f32 path: tight correctness check (exact-arithmetic sanity) ----
    o1_f32 = bottleneck_forward(x, params1, stride=1, dilation=1,
                                matmul_bf16=False)
    o2_f32 = bottleneck_forward(o1_f32, params2, matmul_bf16=False)
    o2_f32 = jax.block_until_ready(o2_f32)
    r1 = _reference(x, params1)
    r2 = _reference(r1, params2)
    assert o1_f32.shape == r1.shape and o2_f32.shape == r2.shape
    assert jnp.allclose(o1_f32, r1, atol=2e-3, rtol=2e-3), \
        float(jnp.max(jnp.abs(o1_f32 - r1)))
    assert jnp.allclose(o2_f32, r2, atol=2e-3, rtol=2e-3), \
        float(jnp.max(jnp.abs(o2_f32 - r2)))

    # ---- bf16 (default) path: MXU-native operands, f32 accumulation ----
    o1 = bottleneck_forward(x, params1, stride=1, dilation=1)
    o1 = jax.block_until_ready(o1)
    assert o1.shape == r1.shape
    assert jnp.allclose(o1, r1, atol=0.25, rtol=0.05), \
        float(jnp.max(jnp.abs(o1 - r1)))
    o2 = bottleneck_forward(o1, params2)
    o2 = jax.block_until_ready(o2)
    r2b = _reference(o1, params2)
    assert jnp.allclose(o2, r2b, atol=0.25, rtol=0.05), \
        float(jnp.max(jnp.abs(o2 - r2b)))

    print("KERNEL_OK")
</pallas_src>

<mosaic_0001>
module attributes {stable_mosaic.version = 11 : i64} {
  func.func @kernel(%arg0: i32, %arg1: i32, %arg2: memref<512x64xf32, #tpu.memory_space<vmem>>, %arg3: memref<64x64xf32, #tpu.memory_space<vmem>>, %arg4: memref<1x64xf32, #tpu.memory_space<vmem>>, %arg5: memref<512x64xf32, #tpu.memory_space<vmem>>, %arg6: memref<512x64xf32, #tpu.memory_space<vmem>>) attributes {dimension_semantics = [#tpu.dimension_semantics<parallel>, #tpu.dimension_semantics<arbitrary>], iteration_bounds = array<i64: 1, 1>, scalar_prefetch = 0 : i64, scratch_operands = 1 : i64, tpu.core_type = #tpu.core_type<tc>, window_params = [{transform_indices = @transform_0, window_bounds = array<i64: 512, 64>}, {transform_indices = @transform_1, window_bounds = array<i64: 64, 64>}, {pipeline_mode = #tpu.pipeline_mode<synchronous>, transform_indices = @transform_2, window_bounds = array<i64: 1, 64>}, {transform_indices = @transform_3, window_bounds = array<i64: 512, 64>}]} {
    %c0_i32 = arith.constant 0 : i32
    %0 = arith.cmpi eq, %arg1, %c0_i32 : i32
    %1 = arith.extui %0 : i1 to i32
    %c0_i32_0 = arith.constant 0 : i32
    %2 = arith.cmpi ne, %1, %c0_i32_0 : i32
    scf.if %2 {
      %cst_10 = arith.constant 0.000000e+00 : f32
      %12 = vector.broadcast %cst_10 : f32 to vector<512x64xf32>
      %c0_11 = arith.constant 0 : index
      %c0_12 = arith.constant 0 : index
      %13 = vector.load %arg6[%c0_11, %c0_12] : memref<512x64xf32, #tpu.memory_space<vmem>>, vector<512x64xf32>
      tpu.vector_store %arg6[%c0_11, %c0_12], %12 {strides = array<i32>} : memref<512x64xf32, #tpu.memory_space<vmem>>, vector<512x64xf32>,
    } else {
    }
    %c0 = arith.constant 0 : index
    %c0_1 = arith.constant 0 : index
    %3 = vector.load %arg6[%c0, %c0_1] : memref<512x64xf32, #tpu.memory_space<vmem>>, vector<512x64xf32>
    %c0_2 = arith.constant 0 : index
    %c0_3 = arith.constant 0 : index
    %4 = vector.load %arg2[%c0_2, %c0_3] : memref<512x64xf32, #tpu.memory_space<vmem>>, vector<512x64xf32>
    %c0_4 = arith.constant 0 : index
    %c0_5 = arith.constant 0 : index
    %5 = vector.load %arg3[%c0_4, %c0_5] : memref<64x64xf32, #tpu.memory_space<vmem>>, vector<64x64xf32>
    %cst = arith.constant dense<0.000000e+00> : vector<512x64xf32>
    %6 = tpu.matmul %4, %5, %cst {dimension_numbers = #tpu.dot_dimension_numbers<[1], [0], [0], [1], [0, 0, 1, 1], [], []>} : vector<512x64xf32>, vector<64x64xf32>, vector<512x64xf32> -> vector<512x64xf32>
    %7 = arith.addf %3, %6 : vector<512x64xf32>
    %c0_6 = arith.constant 0 : index
    %c0_7 = arith.constant 0 : index
    %8 = vector.load %arg6[%c0_6, %c0_7] : memref<512x64xf32, #tpu.memory_space<vmem>>, vector<512x64xf32>
    tpu.vector_store %arg6[%c0_6, %c0_7], %7 {strides = array<i32>} : memref<512x64xf32, #tpu.memory_space<vmem>>, vector<512x64xf32>,
    %c0_i32_8 = arith.constant 0 : i32
    %9 = arith.cmpi eq, %arg1, %c0_i32_8 : i32
    %10 = arith.extui %9 : i1 to i32
    %c0_i32_9 = arith.constant 0 : i32
    %11 = arith.cmpi ne, %10, %c0_i32_9 : i32
    scf.if %11 {
      %c0_10 = arith.constant 0 : index
      %c0_11 = arith.constant 0 : index
      %12 = vector.load %arg6[%c0_10, %c0_11] : memref<512x64xf32, #tpu.memory_space<vmem>>, vector<512x64xf32>
      %c0_12 = arith.constant 0 : index
      %c0_13 = arith.constant 0 : index
      %13 = vector.load %arg4[%c0_12, %c0_13] : memref<1x64xf32, #tpu.memory_space<vmem>>, vector<1x64xf32>
      %14 = vector.broadcast %13 : vector<1x64xf32> to vector<512x64xf32>
      %15 = arith.addf %12, %14 : vector<512x64xf32>
      %cst_14 = arith.constant 0.000000e+00 : f32
      %16 = vector.broadcast %cst_14 : f32 to vector<512x64xf32>
      %17 = arith.maximumf %15, %16 : vector<512x64xf32>
      %c0_15 = arith.constant 0 : index
      %c0_16 = arith.constant 0 : index
      %18 = vector.load %arg5[%c0_15, %c0_16] : memref<512x64xf32, #tpu.memory_space<vmem>>, vector<512x64xf32>
      tpu.vector_store %arg5[%c0_15, %c0_16], %17 {strides = array<i32>} : memref<512x64xf32, #tpu.memory_space<vmem>>, vector<512x64xf32>,
    } else {
    }
    return
  }
  func.func @transform_0(%arg0: i32, %arg1: i32) -> (i32, i32) {
    %c0_i32 = arith.constant 0 : i32
    return %arg0, %arg1 : i32, i32
  }
  func.func @transform_1(%arg0: i32, %arg1: i32) -> (i32, i32) {
    %c0_i32 = arith.constant 0 : i32
    %c0_i32_0 = arith.constant 0 : i32
    return %arg1, %c0_i32 : i32, i32
  }
  func.func @transform_2(%arg0: i32, %arg1: i32) -> (i32, i32) {
    %c0_i32 = arith.constant 0 : i32
    %c0_i32_0 = arith.constant 0 : i32
    %c0_i32_1 = arith.constant 0 : i32
    return %c0_i32, %c0_i32_0 : i32, i32
  }
  func.func @transform_3(%arg0: i32, %arg1: i32) -> (i32, i32) {
    %c0_i32 = arith.constant 0 : i32
    %c0_i32_0 = arith.constant 0 : i32
    return %arg0, %c0_i32 : i32, i32
  }
}

</mosaic_0001>

<bundles_post_ra>
// kernel: tpu_custom_call.1
= control target key start
LH: loop header
LB: loop body
LE: loop exit
PB: predicated region body
PF: predicated region fallthrough
CT: control target
= control target key end

     0   :  { %vm18_vm0 = vcmask 523264   ;;  %v1469_v3 = vmov 0.0   ;;  %s2296_s1 = inlined_call_operand.vmem [shape: f32[64,64], index: 1, kind: input, shape index: {}]   ;;  %s2297_s0 = inlined_call_operand.vmem [shape: f32[512,64], index: 0, kind: input, shape index: {}]   ;;  %s2298_s2 = inlined_call_operand.vmem [shape: f32[1,64], index: 2, kind: input, shape index: {}]   ;;  %s2299_s3 = inlined_call_operand.vmem [shape: f32[512,64], index: 3, kind: output, shape index: {}]  }
   0x1   :  { %v1493_v0 = vld [vmem:[%s2296_s1] sm:$0xff]  ;;  %v1498_v1 = vld [vmem:[%s2296_s1 + $0x8] sm:$0xff]  ;;  %v1503_v2 = vld [vmem:[%s2296_s1 + $0x10] sm:$0xff]  ;;  %20 = vst.msk [vmem:[#allocation2 + $0x8] sm:$0xff] %vm18_vm0, %v1469_v3 }
   0x2   :  { %19 = vst.msk [vmem:[#allocation2] sm:$0xff] %vm18_vm0, %v1469_v3  ;;  %21 = vst.msk [vmem:[#allocation2 + $0x10] sm:$0xff] %vm18_vm0, %v1469_v3  ;;  %v1444_v4 = vpack.c.bf16 %v1498_v1, %v1493_v0  ;;  %v214_v5 = vld [vmem:[%s2296_s1 + $0x18] sm:$0xff]  ;;  %v215_v7 = vld [vmem:[%s2296_s1 + $0x20] sm:$0xff] }
   0x3   :  { %22 = vst.msk [vmem:[#allocation2 + $0x18] sm:$0xff] %vm18_vm0, %v1469_v3  ;;  %23 = vst.msk [vmem:[#allocation2 + $0x20] sm:$0xff] %vm18_vm0, %v1469_v3  ;;  %v1448_v6 = vpack.c.bf16 %v214_v5, %v1503_v2  ;;  %v216_v8 = vld [vmem:[%s2296_s1 + $0x28] sm:$0xff]  ;;  %v147_v9 = vld [vmem:[%s2297_s0] sm:$0xff] }
   0x4   :  { %24 = vst.msk [vmem:[#allocation2 + $0x28] sm:$0xff] %vm18_vm0, %v1469_v3  ;;  %25 = vst.msk [vmem:[#allocation2 + $0x30] sm:$0xff] %vm18_vm0, %v1469_v3  ;;  %1445 = vmatprep.subr.bf16.mxu0 %v1444_v4  ;;  %1460 = vmatprep.subr.bf16.mxu1 %v1444_v4  ;;  %v179_v10 = vld [vmem:[%s2297_s0 + $0x100] sm:$0xff]  ;;  %v1452_v11 = vpack.c.bf16 %v216_v8, %v215_v7  ;;  %v217_v12 = vld [vmem:[%s2296_s1 + $0x30] sm:$0xff] }
   0x5   :  { %26 = vst.msk [vmem:[#allocation2 + $0x38] sm:$0xff] %vm18_vm0, %v1469_v3  ;;  %27 = vst.msk [vmem:[#allocation2 + $0x40] sm:$0xff] %vm18_vm0, %v1469_v3  ;;  %1447 = vmatpush3.bf16.msra.mxu0 %v1444_v4  ;;  %1464 = vmatpush3.bf16.msra.mxu1 %v1444_v4  ;;  %v218_v13 = vld [vmem:[%s2296_s1 + $0x38] sm:$0xff]  ;;  %v148_v15 = vld [vmem:[%s2297_s0 + $0x8] sm:$0xff] }
   0x6   :  { %28 = vst.msk [vmem:[#allocation2 + $0x48] sm:$0xff] %vm18_vm0, %v1469_v3  ;;  %29 = vst.msk [vmem:[#allocation2 + $0x50] sm:$0xff] %vm18_vm0, %v1469_v3  ;;  %1449 = vmatprep.subr.bf16.mxu0 %v1448_v6  ;;  %1461 = vmatprep.subr.bf16.mxu1 %v1448_v6  ;;  %v1456_v14 = vpack.c.bf16 %v218_v13, %v217_v12  ;;  %v180_v16 = vld [vmem:[%s2297_s0 + $0x108] sm:$0xff]  ;;  %v149_v17 = vld [vmem:[%s2297_s0 + $0x10] sm:$0xff] }
   0x7   :  { %30 = vst.msk [vmem:[#allocation2 + $0x58] sm:$0xff] %vm18_vm0, %v1469_v3  ;;  %31 = vst.msk [vmem:[#allocation2 + $0x60] sm:$0xff] %vm18_vm0, %v1469_v3  ;;  %1348 = vmatprep.mubr.msk.f32.mxu0 %vm18_vm0, %v147_v9  ;;  %1396 = vmatprep.mubr.msk.f32.mxu1 %vm18_vm0, %v179_v10  ;;  %v181_v18 = vld [vmem:[%s2297_s0 + $0x110] sm:$0xff]  ;;  %v150_v19 = vld [vmem:[%s2297_s0 + $0x18] sm:$0xff] }
   0x8   :  { %32 = vst.msk [vmem:[#allocation2 + $0x68] sm:$0xff] %vm18_vm0, %v1469_v3  ;;  %33 = vst.msk [vmem:[#allocation2 + $0x70] sm:$0xff] %vm18_vm0, %v1469_v3  ;;  %v182_v20 = vld [vmem:[%s2297_s0 + $0x118] sm:$0xff]  ;;  %v151_v21 = vld [vmem:[%s2297_s0 + $0x20] sm:$0xff] }
   0x9   :  { %34 = vst.msk [vmem:[#allocation2 + $0x78] sm:$0xff] %vm18_vm0, %v1469_v3  ;;  %35 = vst.msk [vmem:[#allocation2 + $0x80] sm:$0xff] %vm18_vm0, %v1469_v3  ;;  %1451 = vmatpush3.bf16.msra.mxu0 %v1448_v6  ;;  %1465 = vmatpush3.bf16.msra.mxu1 %v1448_v6  ;;  %v183_v22 = vld [vmem:[%s2297_s0 + $0x120] sm:$0xff]  ;;  %v152_v23 = vld [vmem:[%s2297_s0 + $0x28] sm:$0xff] }
   0xa   :  { %36 = vst.msk [vmem:[#allocation2 + $0x88] sm:$0xff] %vm18_vm0, %v1469_v3  ;;  %37 = vst.msk [vmem:[#allocation2 + $0x90] sm:$0xff] %vm18_vm0, %v1469_v3  ;;  %1453 = vmatprep.subr.bf16.mxu0 %v1452_v11  ;;  %1462 = vmatprep.subr.bf16.mxu1 %v1452_v11  ;;  %v184_v24 = vld [vmem:[%s2297_s0 + $0x128] sm:$0xff]  ;;  %v153_v25 = vld [vmem:[%s2297_s0 + $0x30] sm:$0xff] }
   0xb   :  { %38 = vst.msk [vmem:[#allocation2 + $0x98] sm:$0xff] %vm18_vm0, %v1469_v3  ;;  %39 = vst.msk [vmem:[#allocation2 + $0xa0] sm:$0xff] %vm18_vm0, %v1469_v3  ;;  %v185_v26 = vld [vmem:[%s2297_s0 + $0x130] sm:$0xff]  ;;  %v154_v27 = vld [vmem:[%s2297_s0 + $0x38] sm:$0xff] }
   0xc   :  { %40 = vst.msk [vmem:[#allocation2 + $0xa8] sm:$0xff] %vm18_vm0, %v1469_v3  ;;  %41 = vst.msk [vmem:[#allocation2 + $0xb0] sm:$0xff] %vm18_vm0, %v1469_v3  ;;  %v186_v28 = vld [vmem:[%s2297_s0 + $0x138] sm:$0xff]  ;;  %v155_v29 = vld [vmem:[%s2297_s0 + $0x40] sm:$0xff] }
   0xd   :  { %42 = vst.msk [vmem:[#allocation2 + $0xb8] sm:$0xff] %vm18_vm0, %v1469_v3  ;;  %43 = vst.msk [vmem:[#allocation2 + $0xc0] sm:$0xff] %vm18_vm0, %v1469_v3  ;;  %1455 = vmatpush3.bf16.msra.mxu0 %v1452_v11  ;;  %1466 = vmatpush3.bf16.msra.mxu1 %v1452_v11  ;;  %v187_v30 = vld [vmem:[%s2297_s0 + $0x140] sm:$0xff]  ;;  %v156_v31 = vld [vmem:[%s2297_s0 + $0x48] sm:$0xff] }
   0xe   :  { %44 = vst.msk [vmem:[#allocation2 + $0xc8] sm:$0xff] %vm18_vm0, %v1469_v3  ;;  %45 = vst.msk [vmem:[#allocation2 + $0xd0] sm:$0xff] %vm18_vm0, %v1469_v3  ;;  %1457 = vmatprep.subr.bf16.mxu0 %v1456_v14  ;;  %1463 = vmatprep.subr.bf16.mxu1 %v1456_v14  ;;  %v188_v32 = vld [vmem:[%s2297_s0 + $0x148] sm:$0xff]  ;;  %v157_v33 = vld [vmem:[%s2297_s0 + $0x50] sm:$0xff] }
   0xf   :  { %46 = vst.msk [vmem:[#allocation2 + $0xd8] sm:$0xff] %vm18_vm0, %v1469_v3  ;;  %47 = vst.msk [vmem:[#allocation2 + $0xe0] sm:$0xff] %vm18_vm0, %v1469_v3  ;;  %v189_v34 = vld [vmem:[%s2297_s0 + $0x150] sm:$0xff]  ;;  %v158_v35 = vld [vmem:[%s2297_s0 + $0x58] sm:$0xff] }
  0x10   :  { %48 = vst.msk [vmem:[#allocation2 + $0xe8] sm:$0xff] %vm18_vm0, %v1469_v3  ;;  %49 = vst.msk [vmem:[#allocation2 + $0xf0] sm:$0xff] %vm18_vm0, %v1469_v3  ;;  %v190_v36 = vld [vmem:[%s2297_s0 + $0x158] sm:$0xff]  ;;  %v159_v37 = vld [vmem:[%s2297_s0 + $0x60] sm:$0xff] }
  0x11   :  { %50 = vst.msk [vmem:[#allocation2 + $0xf8] sm:$0xff] %vm18_vm0, %v1469_v3  ;;  %51 = vst.msk [vmem:[#allocation2 + $0x100] sm:$0xff] %vm18_vm0, %v1469_v3  ;;  %1459 = vmatpush3.bf16.msra.mxu0 %v1456_v14  ;;  %1467 = vmatpush3.bf16.msra.mxu1 %v1456_v14  ;;  %v191_v38 = vld [vmem:[%s2297_s0 + $0x160] sm:$0xff]  ;;  %v160_v39 = vld [vmem:[%s2297_s0 + $0x68] sm:$0xff] }
  0x12   :  { %52 = vst.msk [vmem:[#allocation2 + $0x108] sm:$0xff] %vm18_vm0, %v1469_v3  ;;  %53 = vst.msk [vmem:[#allocation2 + $0x110] sm:$0xff] %vm18_vm0, %v1469_v3  ;;  %v192_v40 = vld [vmem:[%s2297_s0 + $0x168] sm:$0xff]  ;;  %v161_v41 = vld [vmem:[%s2297_s0 + $0x70] sm:$0xff] }
  0x13   :  { %54 = vst.msk [vmem:[#allocation2 + $0x118] sm:$0xff] %vm18_vm0, %v1469_v3  ;;  %55 = vst.msk [vmem:[#allocation2 + $0x120] sm:$0xff] %vm18_vm0, %v1469_v3  ;;  %v193_v42 = vld [vmem:[%s2297_s0 + $0x170] sm:$0xff]  ;;  %v162_v43 = vld [vmem:[%s2297_s0 + $0x78] sm:$0xff] }
  0x14   :  { %56 = vst.msk [vmem:[#allocation2 + $0x128] sm:$0xff] %vm18_vm0, %v1469_v3  ;;  %57 = vst.msk [vmem:[#allocation2 + $0x130] sm:$0xff] %vm18_vm0, %v1469_v3  ;;  %1349 = vmatmul.mubr.msk.f32.vlgmr.msra.gmra.mrb[0].mxu0 %vm18_vm0, %v148_v15  ;;  %1397 = vmatmul.mubr.msk.f32.vlgmr.msra.gmra.mrb[0].mxu1 %vm18_vm0, %v180_v16  ;;  %v194_v44 = vld [vmem:[%s2297_s0 + $0x178] sm:$0xff]  ;;  %v163_v45 = vld [vmem:[%s2297_s0 + $0x80] sm:$0xff] }
  0x15   :  { %58 = vst.msk [vmem:[#allocation2 + $0x138] sm:$0xff] %vm18_vm0, %v1469_v3  ;;  %59 = vst.msk [vmem:[#allocation2 + $0x140] sm:$0xff] %vm18_vm0, %v1469_v3  ;;  %1351 = vmatprep.mubr.msk.f32.mxu0 %vm18_vm0, %v149_v17  ;;  %1399 = vmatprep.mubr.msk.f32.mxu1 %vm18_vm0, %v181_v18  ;;  %v195_v46 = vld [vmem:[%s2297_s0 + $0x180] sm:$0xff]  ;;  %v164_v47 = vld [vmem:[%s2297_s0 + $0x88] sm:$0xff] }
  0x16   :  { %60 = vst.msk [vmem:[#allocation2 + $0x148] sm:$0xff] %vm18_vm0, %v1469_v3  ;;  %61 = vst.msk [vmem:[#allocation2 + $0x150] sm:$0xff] %vm18_vm0, %v1469_v3  ;;  %v196_v48 = vld [vmem:[%s2297_s0 + $0x188] sm:$0xff]  ;;  %v165_v49 = vld [vmem:[%s2297_s0 + $0x90] sm:$0xff] }
  0x17   :  { %62 = vst.msk [vmem:[#allocation2 + $0x158] sm:$0xff] %vm18_vm0, %v1469_v3  ;;  %63 = vst.msk [vmem:[#allocation2 + $0x160] sm:$0xff] %vm18_vm0, %v1469_v3  ;;  %v197_v50 = vld [vmem:[%s2297_s0 + $0x190] sm:$0xff]  ;;  %v166_v51 = vld [vmem:[%s2297_s0 + $0x98] sm:$0xff] }
  0x18   :  { %64 = vst.msk [vmem:[#allocation2 + $0x168] sm:$0xff] %vm18_vm0, %v1469_v3  ;;  %65 = vst.msk [vmem:[#allocation2 + $0x170] sm:$0xff] %vm18_vm0, %v1469_v3  ;;  %1352 = vmatmul.mubr.msk.f32.gmra.mrb[2].mxu0 %vm18_vm0, %v150_v19  ;;  %1400 = vmatmul.mubr.msk.f32.gmra.mrb[2].mxu1 %vm18_vm0, %v182_v20  ;;  %v198_v52 = vld [vmem:[%s2297_s0 + $0x198] sm:$0xff]  ;;  %v167_v53 = vld [vmem:[%s2297_s0 + $0xa0] sm:$0xff] }
  0x19   :  { %66 = vst.msk [vmem:[#allocation2 + $0x178] sm:$0xff] %vm18_vm0, %v1469_v3  ;;  %67 = vst.msk [vmem:[#allocation2 + $0x180] sm:$0xff] %vm18_vm0, %v1469_v3  ;;  %1354 = vmatprep.mubr.msk.f32.mxu0 %vm18_vm0, %v151_v21  ;;  %1402 = vmatprep.mubr.msk.f32.mxu1 %vm18_vm0, %v183_v22  ;;  %v199_v54 = vld [vmem:[%s2297_s0 + $0x1a0] sm:$0xff]  ;;  %v168_v55 = vld [vmem:[%s2297_s0 + $0xa8] sm:$0xff] }
  0x1a   :  { %68 = vst.msk [vmem:[#allocation2 + $0x188] sm:$0xff] %vm18_vm0, %v1469_v3  ;;  %69 = vst.msk [vmem:[#allocation2 + $0x190] sm:$0xff] %vm18_vm0, %v1469_v3  ;;  %v200_v56 = vld [vmem:[%s2297_s0 + $0x1a8] sm:$0xff]  ;;  %v169_v57 = vld [vmem:[%s2297_s0 + $0xb0] sm:$0xff] }
  0x1b   :  { %70 = vst.msk [vmem:[#allocation2 + $0x198] sm:$0xff] %vm18_vm0, %v1469_v3  ;;  %71 = vst.msk [vmem:[#allocation2 + $0x1a0] sm:$0xff] %vm18_vm0, %v1469_v3  ;;  %v201_v58 = vld [vmem:[%s2297_s0 + $0x1b0] sm:$0xff]  ;;  %v170_v59 = vld [vmem:[%s2297_s0 + $0xb8] sm:$0xff] }
  0x1c   :  { %72 = vst.msk [vmem:[#allocation2 + $0x1a8] sm:$0xff] %vm18_vm0, %v1469_v3  ;;  %73 = vst.msk [vmem:[#allocation2 + $0x1b0] sm:$0xff] %vm18_vm0, %v1469_v3  ;;  %1355 = vmatmul.mubr.msk.f32.gmra.mrb[4].mxu0 %vm18_vm0, %v152_v23  ;;  %1403 = vmatmul.mubr.msk.f32.gmra.mrb[4].mxu1 %vm18_vm0, %v184_v24  ;;  %v202_v60 = vld [vmem:[%s2297_s0 + $0x1b8] sm:$0xff]  ;;  %v171_v61 = vld [vmem:[%s2297_s0 + $0xc0] sm:$0xff] }
  0x1d   :  { %74 = vst.msk [vmem:[#allocation2 + $0x1b8] sm:$0xff] %vm18_vm0, %v1469_v3  ;;  %75 = vst.msk [vmem:[#allocation2 + $0x1c0] sm:$0xff] %vm18_vm0, %v1469_v3  ;;  %1357 = vmatprep.mubr.msk.f32.mxu0 %vm18_vm0, %v153_v25  ;;  %1405 = vmatprep.mubr.msk.f32.mxu1 %vm18_vm0, %v185_v26  ;;  %v203_v62 = vld [vmem:[%s2297_s0 + $0x1c0] sm:$0xff]  ;;  %v172_v63 = vld [vmem:[%s2297_s0 + $0xc8] sm:$0xff] }
  0x1e   :  { %76 = vst.msk [vmem:[#allocation2 + $0x1c8] sm:$0xff] %vm18_vm0, %v1469_v3  ;;  %77 = vst.msk [vmem:[#allocation2 + $0x1d0] sm:$0xff] %vm18_vm0, %v1469_v3  ;;  %v204_v0 = vld [vmem:[%s2297_s0 + $0x1c8] sm:$0xff]  ;;  %v173_v1 = vld [vmem:[%s2297_s0 + $0xd0] sm:$0xff] }
  0x1f   :  { %78 = vst.msk [vmem:[#allocation2 + $0x1d8] sm:$0xff] %vm18_vm0, %v1469_v3  ;;  %79 = vst.msk [vmem:[#allocation2 + $0x1e0] sm:$0xff] %vm18_vm0, %v1469_v3  ;;  %v205_v2 = vld [vmem:[%s2297_s0 + $0x1d0] sm:$0xff]  ;;  %v206_v4 = vld [vmem:[%s2297_s0 + $0x1d8] sm:$0xff] }
  0x20   :  { %80 = vst.msk [vmem:[#allocation2 + $0x1e8] sm:$0xff] %vm18_vm0, %v1469_v3  ;;  %81 = vst.msk [vmem:[#allocation2 + $0x1f0] sm:$0xff] %vm18_vm0, %v1469_v3  ;;  %1358 = vmatmul.mubr.msk.f32.gmra.mrb[6].mxu0 %vm18_vm0, %v154_v27  ;;  %1406 = vmatmul.mubr.msk.f32.gmra.mrb[6].mxu1 %vm18_vm0, %v186_v28  ;;  %v175_v5 = vld [vmem:[%s2297_s0 + $0xe0] sm:$0xff]  ;;  %v176_v7 = vld [vmem:[%s2297_s0 + $0xe8] sm:$0xff] }
  0x21   :  { %82 = vst.msk [vmem:[#allocation2 + $0x1f8] sm:$0xff] %vm18_vm0, %v1469_v3  ;;  %1360 = vmatprep.mubr.msk.f32.mxu0 %vm18_vm0, %v155_v29  ;;  %1408 = vmatprep.mubr.msk.f32.mxu1 %vm18_vm0, %v187_v30  ;;  %v174_v3 = vld [vmem:[%s2297_s0 + $0xd8] sm:$0xff]  ;;  %v207_v6 = vld [vmem:[%s2297_s0 + $0x1e0] sm:$0xff]  ;;  %v208_v8 = vld [vmem:[%s2297_s0 + $0x1e8] sm:$0xff] }
  0x22   :  { %v177_v9 = vld [vmem:[%s2297_s0 + $0xf0] sm:$0xff]  ;;  %v178_v11 = vld [vmem:[%s2297_s0 + $0xf8] sm:$0xff]  ;;  %v84_v13 = vld [vmem:[#allocation2 + $0x8] sm:$0xff] }
  0x23   :  { %v209_v10 = vld [vmem:[%s2297_s0 + $0x1f0] sm:$0xff]  ;;  %v210_v12 = vld [vmem:[%s2297_s0 + $0x1f8] sm:$0xff]  ;;  %v116_v14 = vld [vmem:[#allocation2 + $0x108] sm:$0xff] }
  0x24   :  { %1361 = vmatmul.mubr.msk.f32.gmra.mrb[8].mxu0 %vm18_vm0, %v156_v31  ;;  %1409 = vmatmul.mubr.msk.f32.gmra.mrb[8].mxu1 %vm18_vm0, %v188_v32  ;;  %v83_v15 = vld [vmem:[#allocation2] sm:$0xff]  ;;  %v86_v25 = vld [vmem:[#allocation2 + $0x18] sm:$0xff]  ;;  %v85_v27 = vld [vmem:[#allocation2 + $0x10] sm:$0xff] }
  0x25   :  { %1363 = vmatprep.mubr.msk.f32.mxu0 %vm18_vm0, %v157_v33  ;;  %1411 = vmatprep.mubr.msk.f32.mxu1 %vm18_vm0, %v189_v34  ;;  %v115_v16 = vld [vmem:[#allocation2 + $0x100] sm:$0xff]  ;;  %v118_v26 = vld [vmem:[#allocation2 + $0x118] sm:$0xff]  ;;  %v117_v28 = vld [vmem:[#allocation2 + $0x110] sm:$0xff] }
  0x28   :  { %1364 = vmatmul.mubr.msk.f32.gmra.mrb[10].mxu0 %vm18_vm0, %v158_v35  ;;  %1412 = vmatmul.mubr.msk.f32.gmra.mrb[10].mxu1 %vm18_vm0, %v190_v36 }
  0x29   :  { %1366 = vmatprep.mubr.msk.f32.mxu0 %vm18_vm0, %v159_v37  ;;  %1414 = vmatprep.mubr.msk.f32.mxu1 %vm18_vm0, %v191_v38  ;;  %v88_v37 = vld [vmem:[#allocation2 + $0x28] sm:$0xff] }
  0x2a   :  { %v120_v38 = vld [vmem:[#allocation2 + $0x128] sm:$0xff] }
  0x2c   :  { %1367 = vmatmul.mubr.msk.f32.gmra.mrb[12].mxu0 %vm18_vm0, %v160_v39  ;;  %1415 = vmatmul.mubr.msk.f32.gmra.mrb[12].mxu1 %vm18_vm0, %v192_v40  ;;  %v87_v39 = vld [vmem:[#allocation2 + $0x20] sm:$0xff] }
  0x2d   :  { %1369 = vmatprep.mubr.msk.f32.mxu0 %vm18_vm0, %v161_v41  ;;  %1417 = vmatprep.mubr.msk.f32.mxu1 %vm18_vm0, %v193_v42  ;;  %v119_v40 = vld [vmem:[#allocation2 + $0x120] sm:$0xff] }
  0x2e   :  { %v1916_v41 = vld [vmem:[%s2298_s2] ss:$0 sm:$0xff] }
  0x30   :  { %1370 = vmatmul.mubr.msk.f32.gmra.mrb[14].mxu0 %vm18_vm0, %v162_v43  ;;  %1418 = vmatmul.mubr.msk.f32.gmra.mrb[14].mxu1 %vm18_vm0, %v194_v44 }
  0x31   :  { %1372 = vmatprep.mubr.msk.f32.mxu0 %vm18_vm0, %v163_v45  ;;  %1420 = vmatprep.mubr.msk.f32.mxu1 %vm18_vm0, %v195_v46 }
  0x34   :  { %1373 = vmatmul.mubr.msk.f32.gmra.mrb[16].mxu0 %vm18_vm0, %v164_v47  ;;  %1421 = vmatmul.mubr.msk.f32.gmra.mrb[16].mxu1 %vm18_vm0, %v196_v48  ;;  %v90_v48 = vld [vmem:[#allocation2 + $0x38] sm:$0xff] }
  0x35   :  { %1375 = vmatprep.mubr.msk.f32.mxu0 %vm18_vm0, %v165_v49  ;;  %1423 = vmatprep.mubr.msk.f32.mxu1 %vm18_vm0, %v197_v50  ;;  %v122_v49 = vld [vmem:[#allocation2 + $0x138] sm:$0xff] }
  0x38   :  { %1376 = vmatmul.mubr.msk.f32.gmra.mrb[18].mxu0 %vm18_vm0, %v166_v51  ;;  %1424 = vmatmul.mubr.msk.f32.gmra.mrb[18].mxu1 %vm18_vm0, %v198_v52 }
  0x39   :  { %1378 = vmatprep.mubr.msk.f32.mxu0 %vm18_vm0, %v167_v53  ;;  %1426 = vmatprep.mubr.msk.f32.mxu1 %vm18_vm0, %v199_v54  ;;  %v89_v54 = vld [vmem:[#allocation2 + $0x30] sm:$0xff] }
  0x3c   :  { %1379 = vmatmul.mubr.msk.f32.gmra.mrb[20].mxu0 %vm18_vm0, %v168_v55  ;;  %1427 = vmatmul.mubr.msk.f32.gmra.mrb[20].mxu1 %vm18_vm0, %v200_v56 }
  0x3d   :  { %1381 = vmatprep.mubr.msk.f32.mxu0 %vm18_vm0, %v169_v57  ;;  %1429 = vmatprep.mubr.msk.f32.mxu1 %vm18_vm0, %v201_v58 }
  0x40   :  { %1382 = vmatmul.mubr.msk.f32.gmra.mrb[22].mxu0 %vm18_vm0, %v170_v59  ;;  %1430 = vmatmul.mubr.msk.f32.gmra.mrb[22].mxu1 %vm18_vm0, %v202_v60  ;;  %v121_v59 = vld [vmem:[#allocation2 + $0x130] sm:$0xff] }
  0x41   :  { %1384 = vmatprep.mubr.msk.f32.mxu0 %vm18_vm0, %v171_v61  ;;  %1432 = vmatprep.mubr.msk.f32.mxu1 %vm18_vm0, %v203_v62 }
  0x44   :  { %1385 = vmatmul.mubr.msk.f32.gmra.mrb[24].mxu0 %vm18_vm0, %v172_v63  ;;  %1433 = vmatmul.mubr.msk.f32.gmra.mrb[24].mxu1 %vm18_vm0, %v204_v0 }
  0x45   :  { %1387 = vmatprep.mubr.msk.f32.mxu0 %vm18_vm0, %v173_v1  ;;  %1435 = vmatprep.mubr.msk.f32.mxu1 %vm18_vm0, %v205_v2 }
  0x48   :  { %1388 = vmatmul.mubr.msk.f32.gmra.mrb[26].mxu0 %vm18_vm0, %v174_v3  ;;  %1436 = vmatmul.mubr.msk.f32.gmra.mrb[26].mxu1 %vm18_vm0, %v206_v4 }
  0x49   :  { %1390 = vmatprep.mubr.msk.f32.mxu0 %vm18_vm0, %v175_v5  ;;  %1438 = vmatprep.mubr.msk.f32.mxu1 %vm18_vm0, %v207_v6  ;;  %v92_v6 = vld [vmem:[#allocation2 + $0x48] sm:$0xff] }
  0x4c   :  { %1391 = vmatmul.mubr.msk.f32.gmra.mrb[28].mxu0 %vm18_vm0, %v176_v7  ;;  %1439 = vmatmul.mubr.msk.f32.gmra.mrb[28].mxu1 %vm18_vm0, %v208_v8  ;;  %v124_v7 = vld [vmem:[#allocation2 + $0x148] sm:$0xff] }
  0x4d   :  { %1393 = vmatprep.mubr.msk.f32.mxu0 %vm18_vm0, %v177_v9  ;;  %1441 = vmatprep.mubr.msk.f32.mxu1 %vm18_vm0, %v209_v10 }
  0x50   :  { %1394 = vmatmul.mubr.msk.f32.gmra.mrb[30].mxu0 %vm18_vm0, %v178_v11  ;;  %1442 = vmatmul.mubr.msk.f32.gmra.mrb[30].mxu1 %vm18_vm0, %v210_v12 }
  0xe7   :  { %v1350_v17 = vpop.f32.mrb[0].mxu0  ;;  %v1398_v18 = vpop.f32.mrb[0].mxu1 }
  0xe8   :  { %v798_v19 = vadd.f32 %v1350_v17, %v84_v13  ;;  %v830_v20 = vadd.f32 %v1398_v18, %v116_v14  ;;  %v478_v21 = vpop.f32.mrb[1].mxu0  ;;  %v638_v22 = vpop.f32.mrb[1].mxu1  ;;  %v91_v14 = vld [vmem:[#allocation2 + $0x40] sm:$0xff] }
  0xe9   :  { %v797_v23 = vadd.f32 %v478_v21, %v83_v15  ;;  %v829_v24 = vadd.f32 %v638_v22, %v115_v16 }
  0xea   :  { %862 = vst.msk [vmem:[#allocation2 + $0x8] sm:$0xff] %vm18_vm0, %v798_v19  ;;  %894 = vst.msk [vmem:[#allocation2 + $0x108] sm:$0xff] %vm18_vm0, %v830_v20  ;;  %v123_v19 = vld [vmem:[#allocation2 + $0x140] sm:$0xff] }
  0xeb   :  { %861 = vst.msk [vmem:[#allocation2] sm:$0xff] %vm18_vm0, %v797_v23  ;;  %893 = vst.msk [vmem:[#allocation2 + $0x100] sm:$0xff] %vm18_vm0, %v829_v24  ;;  %v1353_v29 = vpop.f32.mrb[2].mxu0  ;;  %v1401_v30 = vpop.f32.mrb[2].mxu1 }
  0xec   :  { %v800_v31 = vadd.f32 %v1353_v29, %v86_v25  ;;  %v832_v32 = vadd.f32 %v1401_v30, %v118_v26  ;;  %v488_v33 = vpop.f32.mrb[3].mxu0  ;;  %v648_v34 = vpop.f32.mrb[3].mxu1  ;;  %v94_v30 = vld [vmem:[#allocation2 + $0x58] sm:$0xff] }
  0xed   :  { %v799_v35 = vadd.f32 %v488_v33, %v85_v27  ;;  %v831_v36 = vadd.f32 %v648_v34, %v117_v28 }
  0xee   :  { %864 = vst.msk [vmem:[#allocation2 + $0x18] sm:$0xff] %vm18_vm0, %v800_v31  ;;  %896 = vst.msk [vmem:[#allocation2 + $0x118] sm:$0xff] %vm18_vm0, %v832_v32  ;;  %v126_v31 = vld [vmem:[#allocation2 + $0x158] sm:$0xff] }
  0xef   :  { %863 = vst.msk [vmem:[#allocation2 + $0x10] sm:$0xff] %vm18_vm0, %v799_v35  ;;  %895 = vst.msk [vmem:[#allocation2 + $0x110] sm:$0xff] %vm18_vm0, %v831_v36  ;;  %v1356_v42 = vpop.f32.mrb[4].mxu0  ;;  %v1404_v43 = vpop.f32.mrb[4].mxu1 }
  0xf0   :  { %v802_v44 = vadd.f32 %v1356_v42, %v88_v37  ;;  %v834_v45 = vadd.f32 %v1404_v43, %v120_v38  ;;  %v498_v46 = vpop.f32.mrb[5].mxu0  ;;  %v658_v47 = vpop.f32.mrb[5].mxu1  ;;  %v93_v38 = vld [vmem:[#allocation2 + $0x50] sm:$0xff] }
  0xf1   :  { %v929_v50 = vld [vmem:[#allocation2 + $0x8] sm:$0xff]  ;;  %v801_v52 = vadd.f32 %v498_v46, %v87_v39  ;;  %v833_v53 = vadd.f32 %v658_v47, %v119_v40 }
  0xf2   :  { %v961_v51 = vld [vmem:[#allocation2 + $0x108] sm:$0xff]  ;;  %v1000_v55 = vadd.f32 %v1916_v41, %v929_v50  ;;  %v928_v57 = vld [vmem:[#allocation2] sm:$0xff]  ;;  %866 = vst.msk [vmem:[#allocation2 + $0x28] sm:$0xff] %vm18_vm0, %v802_v44  ;;  %898 = vst.msk [vmem:[#allocation2 + $0x128] sm:$0xff] %vm18_vm0, %v834_v45 }
  0xf3   :  { %v1032_v56 = vadd.f32 %v1916_v41, %v961_v51  ;;  %v960_v58 = vld [vmem:[#allocation2 + $0x100] sm:$0xff]  ;;  %v999_v60 = vadd.f32 %v1916_v41, %v928_v57  ;;  %865 = vst.msk [vmem:[#allocation2 + $0x20] sm:$0xff] %vm18_vm0, %v801_v52  ;;  %897 = vst.msk [vmem:[#allocation2 + $0x120] sm:$0xff] %vm18_vm0, %v833_v53  ;;  %v1359_v62 = vpop.f32.mrb[6].mxu0  ;;  %v1407_v63 = vpop.f32.mrb[6].mxu1  ;;  %v125_v44 = vld [vmem:[#allocation2 + $0x150] sm:$0xff] }
  0xf4   :  { %v1031_v61 = vadd.f32 %v1916_v41, %v960_v58  ;;  %v1064_v0 = vmax.f32 %v1000_v55, 0.0  ;;  %v804_v2 = vadd.f32 %v1359_v62, %v90_v48  ;;  %v836_v3 = vadd.f32 %v1407_v63, %v122_v49  ;;  %v508_v4 = vpop.f32.mrb[7].mxu0  ;;  %v668_v5 = vpop.f32.mrb[7].mxu1  ;;  %v96_v55 = vld [vmem:[#allocation2 + $0x68] sm:$0xff]  ;;  %v95_v63 = vld [vmem:[#allocation2 + $0x60] sm:$0xff] }
  0xf5   :  { %v1096_v1 = vmax.f32 %v1032_v56, 0.0  ;;  %v1063_v8 = vmax.f32 %v999_v60, 0.0  ;;  %v931_v10 = vld [vmem:[#allocation2 + $0x18] sm:$0xff]  ;;  %v803_v12 = vadd.f32 %v508_v4, %v89_v54  ;;  %v835_v13 = vadd.f32 %v668_v5, %v121_v59  ;;  %v128_v56 = vld [vmem:[#allocation2 + $0x168] sm:$0xff]  ;;  %v127_v4 = vld [vmem:[#allocation2 + $0x160] sm:$0xff] }
  0xf6   :  { %v1095_v9 = vmax.f32 %v1031_v61, 0.0  ;;  %v963_v11 = vld [vmem:[#allocation2 + $0x118] sm:$0xff]  ;;  %1128 = vst.msk [vmem:[%s2299_s3 + $0x8] sm:$0xff] %vm18_vm0, %v1064_v0  ;;  %v1002_v15 = vadd.f32 %v1916_v41, %v931_v10  ;;  %v930_v17 = vld [vmem:[#allocation2 + $0x10] sm:$0xff]  ;;  %868 = vst.msk [vmem:[#allocation2 + $0x38] sm:$0xff] %vm18_vm0, %v804_v2 }
  0xf7   :  { %1160 = vst.msk [vmem:[%s2299_s3 + $0x108] sm:$0xff] %vm18_vm0, %v1096_v1  ;;  %v1034_v16 = vadd.f32 %v1916_v41, %v963_v11  ;;  %v962_v18 = vld [vmem:[#allocation2 + $0x110] sm:$0xff]  ;;  %900 = vst.msk [vmem:[#allocation2 + $0x138] sm:$0xff] %vm18_vm0, %v836_v3  ;;  %v1001_v20 = vadd.f32 %v1916_v41, %v930_v17  ;;  %v1362_v22 = vpop.f32.mrb[8].mxu0  ;;  %v1410_v23 = vpop.f32.mrb[8].mxu1 }
  0xf8   :  { %1127 = vst.msk [vmem:[%s2299_s3] sm:$0xff] %vm18_vm0, %v1063_v8  ;;  %1159 = vst.msk [vmem:[%s2299_s3 + $0x100] sm:$0xff] %vm18_vm0, %v1095_v9  ;;  %v1033_v21 = vadd.f32 %v1916_v41, %v962_v18  ;;  %v1066_v24 = vmax.f32 %v1002_v15, 0.0  ;;  %v806_v26 = vadd.f32 %v1362_v22, %v92_v6  ;;  %v838_v27 = vadd.f32 %v1410_v23, %v124_v7  ;;  %v518_v28 = vpop.f32.mrb[9].mxu0  ;;  %v678_v29 = vpop.f32.mrb[9].mxu1  ;;  %v98_v15 = vld [vmem:[#allocation2 + $0x78] sm:$0xff] }
  0xf9   :  { %867 = vst.msk [vmem:[#allocation2 + $0x30] sm:$0xff] %vm18_vm0, %v803_v12  ;;  %899 = vst.msk [vmem:[#allocation2 + $0x130] sm:$0xff] %vm18_vm0, %v835_v13  ;;  %v1098_v25 = vmax.f32 %v1034_v16, 0.0  ;;  %v1065_v32 = vmax.f32 %v1001_v20, 0.0  ;;  %v933_v34 = vld [vmem:[#allocation2 + $0x28] sm:$0xff]  ;;  %v805_v36 = vadd.f32 %v518_v28, %v91_v14  ;;  %v837_v37 = vadd.f32 %v678_v29, %v123_v19  ;;  %v130_v16 = vld [vmem:[#allocation2 + $0x178] sm:$0xff] }
  0xfa   :  { %v1097_v33 = vmax.f32 %v1033_v21, 0.0  ;;  %v965_v35 = vld [vmem:[#allocation2 + $0x128] sm:$0xff]  ;;  %1130 = vst.msk [vmem:[%s2299_s3 + $0x18] sm:$0xff] %vm18_vm0, %v1066_v24  ;;  %v1004_v39 = vadd.f32 %v1916_v41, %v933_v34  ;;  %v932_v42 = vld [vmem:[#allocation2 + $0x20] sm:$0xff]  ;;  %870 = vst.msk [vmem:[#allocation2 + $0x48] sm:$0xff] %vm18_vm0, %v806_v26 }
  0xfb   :  { %1162 = vst.msk [vmem:[%s2299_s3 + $0x118] sm:$0xff] %vm18_vm0, %v1098_v25  ;;  %v1036_v40 = vadd.f32 %v1916_v41, %v965_v35  ;;  %v964_v43 = vld [vmem:[#allocation2 + $0x120] sm:$0xff]  ;;  %902 = vst.msk [vmem:[#allocation2 + $0x148] sm:$0xff] %vm18_vm0, %v838_v27  ;;  %v1003_v45 = vadd.f32 %v1916_v41, %v932_v42  ;;  %v1365_v47 = vpop.f32.mrb[10].mxu0  ;;  %v1413_v48 = vpop.f32.mrb[10].mxu1  ;;  %v97_v23 = vld [vmem:[#allocation2 + $0x70] sm:$0xff] }
  0xfc   :  { %1129 = vst.msk [vmem:[%s2299_s3 + $0x10] sm:$0xff] %vm18_vm0, %v1065_v32  ;;  %1161 = vst.msk [vmem:[%s2299_s3 + $0x110] sm:$0xff] %vm18_vm0, %v1097_v33  ;;  %v1035_v46 = vadd.f32 %v1916_v41, %v964_v43  ;;  %v1068_v49 = vmax.f32 %v1004_v39, 0.0  ;;  %v808_v51 = vadd.f32 %v1365_v47, %v94_v30  ;;  %v840_v52 = vadd.f32 %v1413_v48, %v126_v31  ;;  %v528_v53 = vpop.f32.mrb[11].mxu0  ;;  %v688_v54 = vpop.f32.mrb[11].mxu1  ;;  %v129_v28 = vld [vmem:[#allocation2 + $0x170] sm:$0xff] }
  0xfd   :  { %869 = vst.msk [vmem:[#allocation2 + $0x40] sm:$0xff] %vm18_vm0, %v805_v36  ;;  %901 = vst.msk [vmem:[#allocation2 + $0x140] sm:$0xff] %vm18_vm0, %v837_v37  ;;  %v1100_v50 = vmax.f32 %v1036_v40, 0.0  ;;  %v1067_v57 = vmax.f32 %v1003_v45, 0.0  ;;  %v935_v59 = vld [vmem:[#allocation2 + $0x38] sm:$0xff]  ;;  %v807_v61 = vadd.f32 %v528_v53, %v93_v38  ;;  %v839_v62 = vadd.f32 %v688_v54, %v125_v44  ;;  %v100_v39 = vld [vmem:[#allocation2 + $0x88] sm:$0xff] }
  0xfe   :  { %v1099_v58 = vmax.f32 %v1035_v46, 0.0  ;;  %v967_v60 = vld [vmem:[#allocation2 + $0x138] sm:$0xff]  ;;  %1132 = vst.msk [vmem:[%s2299_s3 + $0x28] sm:$0xff] %vm18_vm0, %v1068_v49  ;;  %v1006_v0 = vadd.f32 %v1916_v41, %v935_v59  ;;  %872 = vst.msk [vmem:[#allocation2 + $0x58] sm:$0xff] %vm18_vm0, %v808_v51  ;;  %v132_v40 = vld [vmem:[#allocation2 + $0x188] sm:$0xff] }
  0xff   :  { %1164 = vst.msk [vmem:[%s2299_s3 + $0x128] sm:$0xff] %vm18_vm0, %v1100_v50  ;;  %v1038_v1 = vadd.f32 %v1916_v41, %v967_v60  ;;  %904 = vst.msk [vmem:[#allocation2 + $0x158] sm:$0xff] %vm18_vm0, %v840_v52  ;;  %v1368_v7 = vpop.f32.mrb[12].mxu0  ;;  %v1416_v8 = vpop.f32.mrb[12].mxu1  ;;  %v99_v48 = vld [vmem:[#allocation2 + $0x80] sm:$0xff] }
 0x100   :  { %v934_v2 = vld [vmem:[#allocation2 + $0x30] sm:$0xff]  ;;  %1131 = vst.msk [vmem:[%s2299_s3 + $0x20] sm:$0xff] %vm18_vm0, %v1067_v57  ;;  %1163 = vst.msk [vmem:[%s2299_s3 + $0x120] sm:$0xff] %vm18_vm0, %v1099_v58  ;;  %v1070_v9 = vmax.f32 %v1006_v0, 0.0  ;;  %v810_v11 = vadd.f32 %v1368_v7, %v96_v55  ;;  %v842_v12 = vadd.f32 %v1416_v8, %v128_v56  ;;  %v538_v13 = vpop.f32.mrb[13].mxu0  ;;  %v698_v14 = vpop.f32.mrb[13].mxu1 }
 0x101   :  { %v966_v3 = vld [vmem:[#allocation2 + $0x130] sm:$0xff]  ;;  %v1005_v5 = vadd.f32 %v1916_v41, %v934_v2  ;;  %871 = vst.msk [vmem:[#allocation2 + $0x50] sm:$0xff] %vm18_vm0, %v807_v61  ;;  %903 = vst.msk [vmem:[#allocation2 + $0x150] sm:$0xff] %vm18_vm0, %v839_v62  ;;  %v1102_v10 = vmax.f32 %v1038_v1, 0.0  ;;  %v937_v19 = vld [vmem:[#allocation2 + $0x48] sm:$0xff]  ;;  %v809_v21 = vadd.f32 %v538_v13, %v95_v63  ;;  %v841_v22 = vadd.f32 %v698_v14, %v127_v4 }
 0x102   :  { %v1037_v6 = vadd.f32 %v1916_v41, %v966_v3  ;;  %v969_v20 = vld [vmem:[#allocation2 + $0x148] sm:$0xff]  ;;  %1134 = vst.msk [vmem:[%s2299_s3 + $0x38] sm:$0xff] %vm18_vm0, %v1070_v9  ;;  %v1008_v24 = vadd.f32 %v1916_v41, %v937_v19  ;;  %874 = vst.msk [vmem:[#allocation2 + $0x68] sm:$0xff] %vm18_vm0, %v810_v11  ;;  %v131_v53 = vld [vmem:[#allocation2 + $0x180] sm:$0xff] }
 0x103   :  { %v1069_v17 = vmax.f32 %v1005_v5, 0.0  ;;  %1166 = vst.msk [vmem:[%s2299_s3 + $0x138] sm:$0xff] %vm18_vm0, %v1102_v10  ;;  %v1040_v25 = vadd.f32 %v1916_v41, %v969_v20  ;;  %906 = vst.msk [vmem:[#allocation2 + $0x168] sm:$0xff] %vm18_vm0, %v842_v12  ;;  %v1371_v31 = vpop.f32.mrb[14].mxu0  ;;  %v1419_v32 = vpop.f32.mrb[14].mxu1  ;;  %v102_v0 = vld [vmem:[#allocation2 + $0x98] sm:$0xff] }
 0x104   :  { %v1101_v18 = vmax.f32 %v1037_v6, 0.0  ;;  %v936_v26 = vld [vmem:[#allocation2 + $0x40] sm:$0xff]  ;;  %873 = vst.msk [vmem:[#allocation2 + $0x60] sm:$0xff] %vm18_vm0, %v809_v21  ;;  %905 = vst.msk [vmem:[#allocation2 + $0x160] sm:$0xff] %vm18_vm0, %v841_v22  ;;  %v1072_v33 = vmax.f32 %v1008_v24, 0.0  ;;  %v812_v35 = vadd.f32 %v1371_v31, %v98_v15  ;;  %v844_v36 = vadd.f32 %v1419_v32, %v130_v16  ;;  %v548_v37 = vpop.f32.mrb[15].mxu0 }
 0x105   :  { %v968_v27 = vld [vmem:[#allocation2 + $0x140] sm:$0xff]  ;;  %1133 = vst.msk [vmem:[%s2299_s3 + $0x30] sm:$0xff] %vm18_vm0, %v1069_v17  ;;  %v1007_v29 = vadd.f32 %v1916_v41, %v936_v26  ;;  %v1104_v34 = vmax.f32 %v1040_v25, 0.0  ;;  %v708_v38 = vpop.f32.mrb[15].mxu1  ;;  %v939_v44 = vld [vmem:[#allocation2 + $0x58] sm:$0xff]  ;;  %v811_v46 = vadd.f32 %v548_v37, %v97_v23  ;;  %v101_v8 = vld [vmem:[#allocation2 + $0x90] sm:$0xff] }
 0x106   :  { %1165 = vst.msk [vmem:[%s2299_s3 + $0x130] sm:$0xff] %vm18_vm0, %v1101_v18  ;;  %v1039_v30 = vadd.f32 %v1916_v41, %v968_v27  ;;  %v971_v45 = vld [vmem:[#allocation2 + $0x158] sm:$0xff]  ;;  %v843_v47 = vadd.f32 %v708_v38, %v129_v28  ;;  %1136 = vst.msk [vmem:[%s2299_s3 + $0x48] sm:$0xff] %vm18_vm0, %v1072_v33  ;;  %v1010_v49 = vadd.f32 %v1916_v41, %v939_v44  ;;  %v133_v13 = vld [vmem:[#allocation2 + $0x190] sm:$0xff] }
 0x107   :  { %v1071_v42 = vmax.f32 %v1007_v29, 0.0  ;;  %1168 = vst.msk [vmem:[%s2299_s3 + $0x148] sm:$0xff] %vm18_vm0, %v1104_v34  ;;  %v1042_v50 = vadd.f32 %v1916_v41, %v971_v45  ;;  %876 = vst.msk [vmem:[#allocation2 + $0x78] sm:$0xff] %vm18_vm0, %v812_v35  ;;  %v1374_v56 = vpop.f32.mrb[16].mxu0  ;;  %v1422_v57 = vpop.f32.mrb[16].mxu1  ;;  %v134_v1 = vld [vmem:[#allocation2 + $0x198] sm:$0xff] }
 0x108   :  { %v1103_v43 = vmax.f32 %v1039_v30, 0.0  ;;  %v938_v51 = vld [vmem:[#allocation2 + $0x50] sm:$0xff]  ;;  %908 = vst.msk [vmem:[#allocation2 + $0x178] sm:$0xff] %vm18_vm0, %v844_v36  ;;  %875 = vst.msk [vmem:[#allocation2 + $0x70] sm:$0xff] %vm18_vm0, %v811_v46  ;;  %v1074_v58 = vmax.f32 %v1010_v49, 0.0  ;;  %v814_v60 = vadd.f32 %v1374_v56, %v100_v39  ;;  %v846_v61 = vadd.f32 %v1422_v57, %v132_v40  ;;  %v558_v62 = vpop.f32.mrb[17].mxu0 }
 0x109   :  { %v970_v52 = vld [vmem:[#allocation2 + $0x150] sm:$0xff]  ;;  %1135 = vst.msk [vmem:[%s2299_s3 + $0x40] sm:$0xff] %vm18_vm0, %v1071_v42  ;;  %v1009_v54 = vadd.f32 %v1916_v41, %v938_v51  ;;  %907 = vst.msk [vmem:[#allocation2 + $0x170] sm:$0xff] %vm18_vm0, %v843_v47  ;;  %v1106_v59 = vmax.f32 %v1042_v50, 0.0  ;;  %v718_v63 = vpop.f32.mrb[17].mxu1  ;;  %v941_v4 = vld [vmem:[#allocation2 + $0x68] sm:$0xff]  ;;  %v813_v6 = vadd.f32 %v558_v62, %v99_v48 }
 0x10a   :  { %1167 = vst.msk [vmem:[%s2299_s3 + $0x140] sm:$0xff] %vm18_vm0, %v1103_v43  ;;  %v1041_v55 = vadd.f32 %v1916_v41, %v970_v52  ;;  %v973_v5 = vld [vmem:[#allocation2 + $0x168] sm:$0xff]  ;;  %v845_v7 = vadd.f32 %v718_v63, %v131_v53  ;;  %1138 = vst.msk [vmem:[%s2299_s3 + $0x58] sm:$0xff] %vm18_vm0, %v1074_v58  ;;  %v1012_v9 = vadd.f32 %v1916_v41, %v941_v4  ;;  %v103_v32 = vld [vmem:[#allocation2 + $0xa0] sm:$0xff] }
 0x10b   :  { %v1073_v2 = vmax.f32 %v1009_v54, 0.0  ;;  %1170 = vst.msk [vmem:[%s2299_s3 + $0x158] sm:$0xff] %vm18_vm0, %v1106_v59  ;;  %v1044_v10 = vadd.f32 %v1916_v41, %v973_v5  ;;  %v940_v11 = vld [vmem:[#allocation2 + $0x60] sm:$0xff]  ;;  %878 = vst.msk [vmem:[#allocation2 + $0x88] sm:$0xff] %vm18_vm0, %v814_v60  ;;  %v1377_v16 = vpop.f32.mrb[18].mxu0  ;;  %v1425_v17 = vpop.f32.mrb[18].mxu1 }
 0x10c   :  { %v1105_v3 = vmax.f32 %v1041_v55, 0.0  ;;  %v972_v12 = vld [vmem:[#allocation2 + $0x160] sm:$0xff]  ;;  %910 = vst.msk [vmem:[#allocation2 + $0x188] sm:$0xff] %vm18_vm0, %v846_v61  ;;  %v1011_v14 = vadd.f32 %v1916_v41, %v940_v11  ;;  %877 = vst.msk [vmem:[#allocation2 + $0x80] sm:$0xff] %vm18_vm0, %v813_v6  ;;  %v1076_v18 = vmax.f32 %v1012_v9, 0.0  ;;  %v816_v20 = vadd.f32 %v1377_v16, %v102_v0  ;;  %v568_v22 = vpop.f32.mrb[19].mxu0 }
 0x10d   :  { %1137 = vst.msk [vmem:[%s2299_s3 + $0x50] sm:$0xff] %vm18_vm0, %v1073_v2  ;;  %v1043_v15 = vadd.f32 %v1916_v41, %v972_v12  ;;  %909 = vst.msk [vmem:[#allocation2 + $0x180] sm:$0xff] %vm18_vm0, %v845_v7  ;;  %v1108_v19 = vmax.f32 %v1044_v10, 0.0  ;;  %v848_v21 = vadd.f32 %v1425_v17, %v134_v1  ;;  %v728_v23 = vpop.f32.mrb[19].mxu1  ;;  %v104_v24 = vld [vmem:[#allocation2 + $0xa8] sm:$0xff]  ;;  %v815_v30 = vadd.f32 %v568_v22, %v101_v8  ;;  %v135_v37 = vld [vmem:[#allocation2 + $0x1a0] sm:$0xff] }
 0x10e   :  { %1169 = vst.msk [vmem:[%s2299_s3 + $0x150] sm:$0xff] %vm18_vm0, %v1105_v3  ;;  %v136_v25 = vld [vmem:[#allocation2 + $0x1a8] sm:$0xff]  ;;  %v1075_v26 = vmax.f32 %v1011_v14, 0.0  ;;  %v943_v28 = vld [vmem:[#allocation2 + $0x78] sm:$0xff]  ;;  %v847_v31 = vadd.f32 %v728_v23, %v133_v13  ;;  %1140 = vst.msk [vmem:[%s2299_s3 + $0x68] sm:$0xff] %vm18_vm0, %v1076_v18 }
 0x10f   :  { %v1107_v27 = vmax.f32 %v1043_v15, 0.0  ;;  %v975_v29 = vld [vmem:[#allocation2 + $0x178] sm:$0xff]  ;;  %1172 = vst.msk [vmem:[%s2299_s3 + $0x168] sm:$0xff] %vm18_vm0, %v1108_v19  ;;  %v1014_v33 = vadd.f32 %v1916_v41, %v943_v28  ;;  %v942_v35 = vld [vmem:[#allocation2 + $0x70] sm:$0xff]  ;;  %880 = vst.msk [vmem:[#allocation2 + $0x98] sm:$0xff] %vm18_vm0, %v816_v20  ;;  %v1380_v40 = vpop.f32.mrb[20].mxu0 }
 0x110   :  { %v1046_v34 = vadd.f32 %v1916_v41, %v975_v29  ;;  %v974_v36 = vld [vmem:[#allocation2 + $0x170] sm:$0xff]  ;;  %912 = vst.msk [vmem:[#allocation2 + $0x198] sm:$0xff] %vm18_vm0, %v848_v21  ;;  %1139 = vst.msk [vmem:[%s2299_s3 + $0x60] sm:$0xff] %vm18_vm0, %v1075_v26  ;;  %v1013_v38 = vadd.f32 %v1916_v41, %v942_v35  ;;  %v1428_v42 = vpop.f32.mrb[20].mxu1  ;;  %v818_v45 = vadd.f32 %v1380_v40, %v104_v24  ;;  %v578_v47 = vpop.f32.mrb[21].mxu0  ;;  %v106_v49 = vld [vmem:[#allocation2 + $0xb8] sm:$0xff] }
 0x111   :  { %1171 = vst.msk [vmem:[%s2299_s3 + $0x160] sm:$0xff] %vm18_vm0, %v1107_v27  ;;  %v1045_v39 = vadd.f32 %v1916_v41, %v974_v36  ;;  %879 = vst.msk [vmem:[#allocation2 + $0x90] sm:$0xff] %vm18_vm0, %v815_v30  ;;  %v1078_v43 = vmax.f32 %v1014_v33, 0.0  ;;  %v850_v46 = vadd.f32 %v1428_v42, %v136_v25  ;;  %v738_v48 = vpop.f32.mrb[21].mxu1  ;;  %v138_v50 = vld [vmem:[#allocation2 + $0x1b8] sm:$0xff]  ;;  %v817_v55 = vadd.f32 %v578_v47, %v103_v32  ;;  %v105_v57 = vld [vmem:[#allocation2 + $0xb0] sm:$0xff] }
 0x112   :  { %911 = vst.msk [vmem:[#allocation2 + $0x190] sm:$0xff] %vm18_vm0, %v847_v31  ;;  %v1110_v44 = vmax.f32 %v1046_v34, 0.0  ;;  %v1077_v51 = vmax.f32 %v1013_v38, 0.0  ;;  %v945_v53 = vld [vmem:[#allocation2 + $0x88] sm:$0xff]  ;;  %v849_v56 = vadd.f32 %v738_v48, %v135_v37  ;;  %882 = vst.msk [vmem:[#allocation2 + $0xa8] sm:$0xff] %vm18_vm0, %v818_v45  ;;  %v137_v62 = vld [vmem:[#allocation2 + $0x1b0] sm:$0xff] }
 0x113   :  { %v1109_v52 = vmax.f32 %v1045_v39, 0.0  ;;  %v977_v54 = vld [vmem:[#allocation2 + $0x188] sm:$0xff]  ;;  %1142 = vst.msk [vmem:[%s2299_s3 + $0x78] sm:$0xff] %vm18_vm0, %v1078_v43  ;;  %v1016_v58 = vadd.f32 %v1916_v41, %v945_v53  ;;  %v944_v60 = vld [vmem:[#allocation2 + $0x80] sm:$0xff]  ;;  %914 = vst.msk [vmem:[#allocation2 + $0x1a8] sm:$0xff] %vm18_vm0, %v850_v46  ;;  %v1383_v1 = vpop.f32.mrb[22].mxu0 }
 0x114   :  { %1174 = vst.msk [vmem:[%s2299_s3 + $0x178] sm:$0xff] %vm18_vm0, %v1110_v44  ;;  %v1048_v59 = vadd.f32 %v1916_v41, %v977_v54  ;;  %v976_v61 = vld [vmem:[#allocation2 + $0x180] sm:$0xff]  ;;  %1141 = vst.msk [vmem:[%s2299_s3 + $0x70] sm:$0xff] %vm18_vm0, %v1077_v51  ;;  %v1015_v63 = vadd.f32 %v1916_v41, %v944_v60  ;;  %v1431_v2 = vpop.f32.mrb[22].mxu1  ;;  %v820_v5 = vadd.f32 %v1383_v1, %v106_v49  ;;  %v588_v7 = vpop.f32.mrb[23].mxu0  ;;  %v108_v9 = vld [vmem:[#allocation2 + $0xc8] sm:$0xff] }
 0x115   :  { %1173 = vst.msk [vmem:[%s2299_s3 + $0x170] sm:$0xff] %vm18_vm0, %v1109_v52  ;;  %v1047_v0 = vadd.f32 %v1916_v41, %v976_v61  ;;  %881 = vst.msk [vmem:[#allocation2 + $0xa0] sm:$0xff] %vm18_vm0, %v817_v55  ;;  %v1080_v3 = vmax.f32 %v1016_v58, 0.0  ;;  %v852_v6 = vadd.f32 %v1431_v2, %v138_v50  ;;  %v748_v8 = vpop.f32.mrb[23].mxu1  ;;  %v140_v10 = vld [vmem:[#allocation2 + $0x1c8] sm:$0xff]  ;;  %v819_v15 = vadd.f32 %v588_v7, %v105_v57  ;;  %v107_v17 = vld [vmem:[#allocation2 + $0xc0] sm:$0xff] }
 0x116   :  { %913 = vst.msk [vmem:[#allocation2 + $0x1a0] sm:$0xff] %vm18_vm0, %v849_v56  ;;  %v1112_v4 = vmax.f32 %v1048_v59, 0.0  ;;  %v1079_v11 = vmax.f32 %v1015_v63, 0.0  ;;  %v947_v13 = vld [vmem:[#allocation2 + $0x98] sm:$0xff]  ;;  %v851_v16 = vadd.f32 %v748_v8, %v137_v62  ;;  %884 = vst.msk [vmem:[#allocation2 + $0xb8] sm:$0xff] %vm18_vm0, %v820_v5  ;;  %v139_v22 = vld [vmem:[#allocation2 + $0x1c0] sm:$0xff] }
 0x117   :  { %v1111_v12 = vmax.f32 %v1047_v0, 0.0  ;;  %v979_v14 = vld [vmem:[#allocation2 + $0x198] sm:$0xff]  ;;  %1144 = vst.msk [vmem:[%s2299_s3 + $0x88] sm:$0xff] %vm18_vm0, %v1080_v3  ;;  %v1018_v18 = vadd.f32 %v1916_v41, %v947_v13  ;;  %916 = vst.msk [vmem:[#allocation2 + $0x1b8] sm:$0xff] %vm18_vm0, %v852_v6  ;;  %v1386_v25 = vpop.f32.mrb[24].mxu0  ;;  %v1434_v26 = vpop.f32.mrb[24].mxu1 }
 0x118   :  { %1176 = vst.msk [vmem:[%s2299_s3 + $0x188] sm:$0xff] %vm18_vm0, %v1112_v4  ;;  %v1050_v19 = vadd.f32 %v1916_v41, %v979_v14  ;;  %v946_v20 = vld [vmem:[#allocation2 + $0x90] sm:$0xff]  ;;  %1143 = vst.msk [vmem:[%s2299_s3 + $0x80] sm:$0xff] %vm18_vm0, %v1079_v11  ;;  %v822_v29 = vadd.f32 %v1386_v25, %v108_v9  ;;  %v854_v30 = vadd.f32 %v1434_v26, %v140_v10  ;;  %v598_v31 = vpop.f32.mrb[25].mxu0  ;;  %v758_v32 = vpop.f32.mrb[25].mxu1  ;;  %v110_v33 = vld [vmem:[#allocation2 + $0xd8] sm:$0xff] }
 0x119   :  { %v978_v21 = vld [vmem:[#allocation2 + $0x190] sm:$0xff]  ;;  %1175 = vst.msk [vmem:[%s2299_s3 + $0x180] sm:$0xff] %vm18_vm0, %v1111_v12  ;;  %v1017_v23 = vadd.f32 %v1916_v41, %v946_v20  ;;  %883 = vst.msk [vmem:[#allocation2 + $0xb0] sm:$0xff] %vm18_vm0, %v819_v15  ;;  %v1082_v27 = vmax.f32 %v1018_v18, 0.0  ;;  %v142_v34 = vld [vmem:[#allocation2 + $0x1d8] sm:$0xff]  ;;  %v821_v39 = vadd.f32 %v598_v31, %v107_v17  ;;  %v853_v40 = vadd.f32 %v758_v32, %v139_v22 }
 0x11a   :  { %v1049_v24 = vadd.f32 %v1916_v41, %v978_v21  ;;  %915 = vst.msk [vmem:[#allocation2 + $0x1b0] sm:$0xff] %vm18_vm0, %v851_v16  ;;  %v1114_v28 = vmax.f32 %v1050_v19, 0.0  ;;  %v949_v37 = vld [vmem:[#allocation2 + $0xa8] sm:$0xff]  ;;  %v109_v42 = vld [vmem:[#allocation2 + $0xd0] sm:$0xff]  ;;  %886 = vst.msk [vmem:[#allocation2 + $0xc8] sm:$0xff] %vm18_vm0, %v822_v29 }
 0x11b   :  { %v1081_v35 = vmax.f32 %v1017_v23, 0.0  ;;  %v981_v38 = vld [vmem:[#allocation2 + $0x1a8] sm:$0xff]  ;;  %1146 = vst.msk [vmem:[%s2299_s3 + $0x98] sm:$0xff] %vm18_vm0, %v1082_v27  ;;  %v1020_v43 = vadd.f32 %v1916_v41, %v949_v37  ;;  %918 = vst.msk [vmem:[#allocation2 + $0x1c8] sm:$0xff] %vm18_vm0, %v854_v30  ;;  %v141_v47 = vld [vmem:[#allocation2 + $0x1d0] sm:$0xff]  ;;  %v1389_v50 = vpop.f32.mrb[26].mxu0 }
 0x11c   :  { %v1113_v36 = vmax.f32 %v1049_v24, 0.0  ;;  %1178 = vst.msk [vmem:[%s2299_s3 + $0x198] sm:$0xff] %vm18_vm0, %v1114_v28  ;;  %v1052_v44 = vadd.f32 %v1916_v41, %v981_v38  ;;  %v948_v45 = vld [vmem:[#allocation2 + $0xa0] sm:$0xff]  ;;  %885 = vst.msk [vmem:[#allocation2 + $0xc0] sm:$0xff] %vm18_vm0, %v821_v39  ;;  %v1437_v51 = vpop.f32.mrb[26].mxu1  ;;  %v824_v54 = vadd.f32 %v1389_v50, %v110_v33  ;;  %v608_v56 = vpop.f32.mrb[27].mxu0 }
 0x11d   :  { %v980_v46 = vld [vmem:[#allocation2 + $0x1a0] sm:$0xff]  ;;  %1145 = vst.msk [vmem:[%s2299_s3 + $0x90] sm:$0xff] %vm18_vm0, %v1081_v35  ;;  %v1019_v48 = vadd.f32 %v1916_v41, %v948_v45  ;;  %917 = vst.msk [vmem:[#allocation2 + $0x1c0] sm:$0xff] %vm18_vm0, %v853_v40  ;;  %v1084_v52 = vmax.f32 %v1020_v43, 0.0  ;;  %v856_v55 = vadd.f32 %v1437_v51, %v142_v34  ;;  %v768_v57 = vpop.f32.mrb[27].mxu1  ;;  %v112_v58 = vld [vmem:[#allocation2 + $0xe8] sm:$0xff]  ;;  %v823_v0 = vadd.f32 %v608_v56, %v109_v42 }
 0x11e   :  { %1177 = vst.msk [vmem:[%s2299_s3 + $0x190] sm:$0xff] %vm18_vm0, %v1113_v36  ;;  %v1051_v49 = vadd.f32 %v1916_v41, %v980_v46  ;;  %v1116_v53 = vmax.f32 %v1052_v44, 0.0  ;;  %v144_v59 = vld [vmem:[#allocation2 + $0x1e8] sm:$0xff]  ;;  %v951_v62 = vld [vmem:[#allocation2 + $0xb8] sm:$0xff]  ;;  %v855_v1 = vadd.f32 %v768_v57, %v141_v47  ;;  %v111_v2 = vld [vmem:[#allocation2 + $0xe0] sm:$0xff] }
 0x11f   :  { %v1083_v60 = vmax.f32 %v1019_v48, 0.0  ;;  %v983_v63 = vld [vmem:[#allocation2 + $0x1b8] sm:$0xff]  ;;  %1148 = vst.msk [vmem:[%s2299_s3 + $0xa8] sm:$0xff] %vm18_vm0, %v1084_v52  ;;  %v1022_v3 = vadd.f32 %v1916_v41, %v951_v62  ;;  %888 = vst.msk [vmem:[#allocation2 + $0xd8] sm:$0xff] %vm18_vm0, %v824_v54  ;;  %v143_v7 = vld [vmem:[#allocation2 + $0x1e0] sm:$0xff]  ;;  %v1392_v10 = vpop.f32.mrb[28].mxu0 }
 0x120   :  { %v1115_v61 = vmax.f32 %v1051_v49, 0.0  ;;  %1180 = vst.msk [vmem:[%s2299_s3 + $0x1a8] sm:$0xff] %vm18_vm0, %v1116_v53  ;;  %v1054_v4 = vadd.f32 %v1916_v41, %v983_v63  ;;  %v950_v5 = vld [vmem:[#allocation2 + $0xb0] sm:$0xff]  ;;  %920 = vst.msk [vmem:[#allocation2 + $0x1d8] sm:$0xff] %vm18_vm0, %v856_v55  ;;  %v1440_v11 = vpop.f32.mrb[28].mxu1  ;;  %v826_v14 = vadd.f32 %v1392_v10, %v112_v58  ;;  %v618_v16 = vpop.f32.mrb[29].mxu0 }
 0x121   :  { %v982_v6 = vld [vmem:[#allocation2 + $0x1b0] sm:$0xff]  ;;  %1147 = vst.msk [vmem:[%s2299_s3 + $0xa0] sm:$0xff] %vm18_vm0, %v1083_v60  ;;  %v1021_v8 = vadd.f32 %v1916_v41, %v950_v5  ;;  %887 = vst.msk [vmem:[#allocation2 + $0xd0] sm:$0xff] %vm18_vm0, %v823_v0  ;;  %v1086_v12 = vmax.f32 %v1022_v3, 0.0  ;;  %v858_v15 = vadd.f32 %v1440_v11, %v144_v59  ;;  %v778_v17 = vpop.f32.mrb[29].mxu1  ;;  %v114_v18 = vld [vmem:[#allocation2 + $0xf8] sm:$0xff]  ;;  %v825_v24 = vadd.f32 %v618_v16, %v111_v2 }
 0x122   :  { %1179 = vst.msk [vmem:[%s2299_s3 + $0x1a0] sm:$0xff] %vm18_vm0, %v1115_v61  ;;  %v1053_v9 = vadd.f32 %v1916_v41, %v982_v6  ;;  %919 = vst.msk [vmem:[#allocation2 + $0x1d0] sm:$0xff] %vm18_vm0, %v855_v1  ;;  %v1118_v13 = vmax.f32 %v1054_v4, 0.0  ;;  %v146_v19 = vld [vmem:[#allocation2 + $0x1f8] sm:$0xff]  ;;  %v953_v22 = vld [vmem:[#allocation2 + $0xc8] sm:$0xff]  ;;  %v857_v25 = vadd.f32 %v778_v17, %v143_v7 }
 0x123   :  { %v1085_v20 = vmax.f32 %v1021_v8, 0.0  ;;  %v985_v23 = vld [vmem:[#allocation2 + $0x1c8] sm:$0xff]  ;;  %v113_v26 = vld [vmem:[#allocation2 + $0xf0] sm:$0xff]  ;;  %1150 = vst.msk [vmem:[%s2299_s3 + $0xb8] sm:$0xff] %vm18_vm0, %v1086_v12  ;;  %v1024_v27 = vadd.f32 %v1916_v41, %v953_v22  ;;  %v952_v29 = vld [vmem:[#allocation2 + $0xc0] sm:$0xff]  ;;  %v1395_v34 = vpop.f32.mrb[30].mxu0 }
 0x124   :  { %v1117_v21 = vmax.f32 %v1053_v9, 0.0  ;;  %1182 = vst.msk [vmem:[%s2299_s3 + $0x1b8] sm:$0xff] %vm18_vm0, %v1118_v13  ;;  %v1056_v28 = vadd.f32 %v1916_v41, %v985_v23  ;;  %v984_v30 = vld [vmem:[#allocation2 + $0x1c0] sm:$0xff]  ;;  %890 = vst.msk [vmem:[#allocation2 + $0xe8] sm:$0xff] %vm18_vm0, %v826_v14  ;;  %v145_v31 = vld [vmem:[#allocation2 + $0x1f0] sm:$0xff]  ;;  %v1023_v32 = vadd.f32 %v1916_v41, %v952_v29  ;;  %v1443_v35 = vpop.f32.mrb[30].mxu1  ;;  %v828_v38 = vadd.f32 %v1395_v34, %v114_v18 }
 0x125   :  { %922 = vst.msk [vmem:[#allocation2 + $0x1e8] sm:$0xff] %vm18_vm0, %v858_v15  ;;  %1149 = vst.msk [vmem:[%s2299_s3 + $0xb0] sm:$0xff] %vm18_vm0, %v1085_v20  ;;  %v1055_v33 = vadd.f32 %v1916_v41, %v984_v30  ;;  %v1088_v36 = vmax.f32 %v1024_v27, 0.0  ;;  %v860_v39 = vadd.f32 %v1443_v35, %v146_v19  ;;  %v628_v40 = vpop.f32.mrb[31].mxu0  ;;  %v788_v42 = vpop.f32.mrb[31].mxu1 }
 0x126   :  { %1181 = vst.msk [vmem:[%s2299_s3 + $0x1b0] sm:$0xff] %vm18_vm0, %v1117_v21  ;;  %889 = vst.msk [vmem:[#allocation2 + $0xe0] sm:$0xff] %vm18_vm0, %v825_v24  ;;  %v1120_v37 = vmax.f32 %v1056_v28, 0.0  ;;  %v1087_v43 = vmax.f32 %v1023_v32, 0.0  ;;  %v955_v45 = vld [vmem:[#allocation2 + $0xd8] sm:$0xff]  ;;  %v827_v47 = vadd.f32 %v628_v40, %v113_v26  ;;  %v859_v48 = vadd.f32 %v788_v42, %v145_v31 }
 0x127   :  { %921 = vst.msk [vmem:[#allocation2 + $0x1e0] sm:$0xff] %vm18_vm0, %v857_v25  ;;  %v1119_v44 = vmax.f32 %v1055_v33, 0.0  ;;  %v987_v46 = vld [vmem:[#allocation2 + $0x1d8] sm:$0xff]  ;;  %1152 = vst.msk [vmem:[%s2299_s3 + $0xc8] sm:$0xff] %vm18_vm0, %v1088_v36  ;;  %v1026_v49 = vadd.f32 %v1916_v41, %v955_v45 }
 0x128   :  { %1184 = vst.msk [vmem:[%s2299_s3 + $0x1c8] sm:$0xff] %vm18_vm0, %v1120_v37  ;;  %v1058_v50 = vadd.f32 %v1916_v41, %v987_v46  ;;  %v954_v51 = vld [vmem:[#allocation2 + $0xd0] sm:$0xff]  ;;  %892 = vst.msk [vmem:[#allocation2 + $0xf8] sm:$0xff] %vm18_vm0, %v828_v38 }
 0x129   :  { %v986_v52 = vld [vmem:[#allocation2 + $0x1d0] sm:$0xff]  ;;  %924 = vst.msk [vmem:[#allocation2 + $0x1f8] sm:$0xff] %vm18_vm0, %v860_v39  ;;  %1151 = vst.msk [vmem:[%s2299_s3 + $0xc0] sm:$0xff] %vm18_vm0, %v1087_v43  ;;  %v1025_v53 = vadd.f32 %v1916_v41, %v954_v51  ;;  %v1090_v55 = vmax.f32 %v1026_v49, 0.0 }
 0x12a   :  { %1183 = vst.msk [vmem:[%s2299_s3 + $0x1c0] sm:$0xff] %vm18_vm0, %v1119_v44  ;;  %v1057_v54 = vadd.f32 %v1916_v41, %v986_v52  ;;  %891 = vst.msk [vmem:[#allocation2 + $0xf0] sm:$0xff] %vm18_vm0, %v827_v47  ;;  %v1122_v56 = vmax.f32 %v1058_v50, 0.0 }
 0x12b   :  { %923 = vst.msk [vmem:[#allocation2 + $0x1f0] sm:$0xff] %vm18_vm0, %v859_v48  ;;  %v1089_v57 = vmax.f32 %v1025_v53, 0.0  ;;  %v957_v59 = vld [vmem:[#allocation2 + $0xe8] sm:$0xff]  ;;  %1154 = vst.msk [vmem:[%s2299_s3 + $0xd8] sm:$0xff] %vm18_vm0, %v1090_v55 }
 0x12c   :  { %v1121_v58 = vmax.f32 %v1057_v54, 0.0  ;;  %v989_v60 = vld [vmem:[#allocation2 + $0x1e8] sm:$0xff]  ;;  %1186 = vst.msk [vmem:[%s2299_s3 + $0x1d8] sm:$0xff] %vm18_vm0, %v1122_v56  ;;  %v1028_v61 = vadd.f32 %v1916_v41, %v957_v59 }
 0x12d   :  { %v1060_v62 = vadd.f32 %v1916_v41, %v989_v60  ;;  %v956_v63 = vld [vmem:[#allocation2 + $0xe0] sm:$0xff]  ;;  %1153 = vst.msk [vmem:[%s2299_s3 + $0xd0] sm:$0xff] %vm18_vm0, %v1089_v57 }
 0x12e   :  { %v988_v0 = vld [vmem:[#allocation2 + $0x1e0] sm:$0xff]  ;;  %1185 = vst.msk [vmem:[%s2299_s3 + $0x1d0] sm:$0xff] %vm18_vm0, %v1121_v58  ;;  %v1027_v1 = vadd.f32 %v1916_v41, %v956_v63  ;;  %v1092_v3 = vmax.f32 %v1028_v61, 0.0 }
 0x12f   :  { %v1059_v2 = vadd.f32 %v1916_v41, %v988_v0  ;;  %v1124_v4 = vmax.f32 %v1060_v62, 0.0  ;;  %v959_v7 = vld [vmem:[#allocation2 + $0xf8] sm:$0xff] }
 0x130   :  { %v1091_v5 = vmax.f32 %v1027_v1, 0.0  ;;  %v991_v8 = vld [vmem:[#allocation2 + $0x1f8] sm:$0xff]  ;;  %1156 = vst.msk [vmem:[%s2299_s3 + $0xe8] sm:$0xff] %vm18_vm0, %v1092_v3  ;;  %v1030_v9 = vadd.f32 %v1916_v41, %v959_v7 }
 0x131   :  { %v1123_v6 = vmax.f32 %v1059_v2, 0.0  ;;  %1188 = vst.msk [vmem:[%s2299_s3 + $0x1e8] sm:$0xff] %vm18_vm0, %v1124_v4  ;;  %v1062_v10 = vadd.f32 %v1916_v41, %v991_v8  ;;  %v958_v11 = vld [vmem:[#allocation2 + $0xf0] sm:$0xff] }
 0x132   :  { %v990_v12 = vld [vmem:[#allocation2 + $0x1f0] sm:$0xff]  ;;  %1155 = vst.msk [vmem:[%s2299_s3 + $0xe0] sm:$0xff] %vm18_vm0, %v1091_v5  ;;  %v1029_v13 = vadd.f32 %v1916_v41, %v958_v11  ;;  %v1094_v15 = vmax.f32 %v1030_v9, 0.0 }
 0x133   :  { %1187 = vst.msk [vmem:[%s2299_s3 + $0x1e0] sm:$0xff] %vm18_vm0, %v1123_v6  ;;  %v1061_v14 = vadd.f32 %v1916_v41, %v990_v12  ;;  %v1126_v16 = vmax.f32 %v1062_v10, 0.0 }
 0x134   :  { %v1093_v17 = vmax.f32 %v1029_v13, 0.0  ;;  %1158 = vst.msk [vmem:[%s2299_s3 + $0xf8] sm:$0xff] %vm18_vm0, %v1094_v15 }
 0x135   :  { %v1125_v18 = vmax.f32 %v1061_v14, 0.0  ;;  %1190 = vst.msk [vmem:[%s2299_s3 + $0x1f8] sm:$0xff] %vm18_vm0, %v1126_v16 }
 0x136   :  { %1157 = vst.msk [vmem:[%s2299_s3 + $0xf0] sm:$0xff] %vm18_vm0, %v1093_v17 }
 0x137   :  { %1189 = vst.msk [vmem:[%s2299_s3 + $0x1f0] sm:$0xff] %vm18_vm0, %v1125_v18 }

</bundles_post_ra>
